<compile_context>
chip_gen: v5e
topology: v5e:2x2
jax: 0.10.0
libtpu: 0.0.40
codegen_flags: <defaults>
</compile_context>

<pallas_src>
import numpy as np
import jax
import jax.numpy as jnp
from jax import lax
from jax.experimental import pallas as pl
from jax.experimental.pallas import tpu as pltpu

EPS = 1e-5       # F.layer_norm default eps
OUTPAD = 128     # regressor output padded to a full lane tile


# ----------------------------- Pallas kernel -------------------------------
def _make_kernel(H, W, K, Cin, Cloc, BB):
    pad = (K - 1) // 2
    HW = H * W
    H2, W2 = H // 2, W // 2
    P = H2 * W2
    KK = K * K
    # flat-index source shifts for the conv1 taps (row-major kh, kw order)
    shifts1 = [dh * W + dw for dh in range(-pad, pad + 1)
               for dw in range(-pad, pad + 1)]
    pool_offs = (1, W, W + 1)     # 2x2 window offsets besides 0

    inv_n1 = 1.0 / float(Cloc * HW)
    inv_n2 = 1.0 / float(Cloc * P)
    inv_p = 1.0 / float(P)

    def ln(v, inv_n):
        # LayerNorm over ALL elements of the per-batch activation
        # (matches F.layer_norm(x, x.shape[-3:]), no affine params).
        # Single pass: sum and sum-of-squares reductions can overlap.
        mu = jnp.sum(v) * inv_n
        var = jnp.sum(v * v) * inv_n - mu * mu
        return (v - mu) * lax.rsqrt(var + EPS)

    def kernel(x_ref, m1_ref, w1_ref, b1_ref, d_ref, s2_ref, w2_ref, b2_ref,
               wr_ref, br_ref, o_ref):
        m1 = m1_ref[...]                                       # (KK, HW)
        for bb in range(BB):                                   # unrolled
            x = x_ref[bb]                                      # (Cin, HW)

            # ---------------- conv1 ('same' padding) ----------------
            # per-tap: roll the lane axis, zero invalid/wrapped taps with the
            # 0/1 mask, then a tiny accumulating matmul.
            h = jnp.zeros((Cloc, HW), jnp.float32)
            for t, s in enumerate(shifts1):
                xt = x if s == 0 else pltpu.roll(x, shift=(-s) % HW, axis=1)
                xt = xt * m1[t:t + 1, :]
                h = h + jnp.dot(w1_ref[t], xt,
                                preferred_element_type=jnp.float32)
            h = h + b1_ref[...]                                # (Cloc, HW)
            h = jnp.maximum(ln(h, inv_n1), 0.0)                # LN + relu1

            # ---------------- MaxPool2d(2, stride=2) ----------------
            # Window max via lane rolls.  Exact regardless of sign: only the
            # (2i, 2j) positions are selected by d_ref, and for those (H, W
            # even) the three neighbour taps are always in-image and never
            # wrapped, so cross-row / wrapped values are never picked.
            mx = h
            for d in pool_offs:
                mx = jnp.maximum(mx, pltpu.roll(h, shift=(HW - d) % HW, axis=1))
            p = jnp.dot(mx, d_ref[...],
                        preferred_element_type=jnp.float32)    # (Cloc, P)

            # ---------------- conv2 ('same' padding) ----------------
            # P = 64 lanes is not lane aligned, so tap shift + validity are
            # folded into 0/1 (P, P) select matrices instead of rolls.
            h2 = jnp.zeros((Cloc, P), jnp.float32)
            for t in range(KK):
                pt = jnp.dot(p, s2_ref[t],
                             preferred_element_type=jnp.float32)   # (Cloc, P)
                h2 = h2 + jnp.dot(w2_ref[t], pt,
                                  preferred_element_type=jnp.float32)
            h2 = h2 + b2_ref[...]
            h2 = jnp.maximum(ln(h2, inv_n2), 0.0)              # LN + relu2

            # -------- global mean pooling + affine regressor ---------
            g = jnp.sum(h2, axis=1, keepdims=True) * inv_p     # (Cloc, 1)
            out = jnp.sum(g * wr_ref[...], axis=0, keepdims=True)  # (1, OUTPAD)
            o_ref[bb] = out + br_ref[...]
            # TODO(synk): transformation_mode='rotation' (sigmoid + cos/sin
            # masks) and global_pooling='max' are non-default branches and
            # are not implemented.

    return kernel


# --------------------------- constant structure -----------------------------
def _make_tap_masks(H, W, K):
    """(K*K, H*W) 0/1 validity masks for 'same'-padding conv taps."""
    pad = (K - 1) // 2
    m = np.zeros((K * K, H * W), np.float32)
    for kh in range(K):
        for kw in range(K):
            dh, dw = kh - pad, kw - pad
            hh = np.arange(H)[:, None] + dh
            ww = np.arange(W)[None, :] + dw
            valid = (hh >= 0) & (hh < H) & (ww >= 0) & (ww < W)
            m[kh * K + kw] = valid.astype(np.float32).reshape(H * W)
    return jnp.asarray(m)


def _make_downsample(H, W):
    """(H*W, H2*W2) 0/1 matrix selecting position (2i, 2j) of every window."""
    H2, W2 = H // 2, W // 2
    D = np.zeros((H * W, H2 * W2), np.float32)
    for i in range(H2):
        for j in range(W2):
            D[(2 * i) * W + 2 * j, i * W2 + j] = 1.0
    return jnp.asarray(D)


def _make_shift_select(H2, W2, K):
    """(K*K, P, P) 0/1 matrices: right-multiplying by S[t] yields the tap-t
    shifted pooled map with out-of-image taps zeroed."""
    pad = (K - 1) // 2
    P = H2 * W2
    S = np.zeros((K * K, P, P), np.float32)
    for kh in range(K):
        for kw in range(K):
            t = kh * K + kw
            dh, dw = kh - pad, kw - pad
            for i in range(H2):
                ii = i + dh
                if not (0 <= ii < H2):
                    continue
                for j in range(W2):
                    jj = j + dw
                    if 0 <= jj < W2:
                        S[t, ii * W2 + jj, i * W2 + j] = 1.0
    return jnp.asarray(S)


# ------------------------------ host wrapper --------------------------------
def localization_net_forward(x_nchw, w1_oihw, b1, w2_oihw, b2, wr, br, kernel_size):
    B, Cin, H, W = x_nchw.shape
    Cloc = w1_oihw.shape[0]
    K = kernel_size
    assert K % 2 == 1 and H % 2 == 0 and W % 2 == 0
    KK = K * K
    HW = H * W
    H2, W2 = H // 2, W // 2
    P = H2 * W2

    # layout glue: channels on sublanes, flattened spatial on lanes
    x_flat = x_nchw.reshape(B, Cin, HW).astype(jnp.float32)
    # per-tap conv weights: (KK, Cout, Cin), tap order (kh, kw) row-major
    w1_taps = jnp.transpose(w1_oihw, (2, 3, 0, 1)).reshape(KK, Cloc, Cin).astype(jnp.float32)
    w2_taps = jnp.transpose(w2_oihw, (2, 3, 0, 1)).reshape(KK, Cloc, Cloc).astype(jnp.float32)
    b1_col = b1.reshape(Cloc, 1).astype(jnp.float32)
    b2_col = b2.reshape(Cloc, 1).astype(jnp.float32)
    wr_pad = jnp.zeros((Cloc, OUTPAD), jnp.float32).at[:, :6].set(wr.astype(jnp.float32))
    br_pad = jnp.zeros((1, OUTPAD), jnp.float32).at[:, :6].set(br.reshape(1, 6).astype(jnp.float32))

    m1 = _make_tap_masks(H, W, K)           # (KK, HW)
    dsel = _make_downsample(H, W)           # (HW, P)
    s2sel = _make_shift_select(H2, W2, K)   # (KK, P, P)

    # Batch chunking: at most two grid steps (one per TensorCore on v7x);
    # per-step overhead is amortized over BB elements on single-core chips.
    if B >= 2 and B % 2 == 0:
        num_steps, BB = 2, B // 2
    else:
        num_steps, BB = B, 1

    kernel = _make_kernel(H, W, K, Cin, Cloc, BB)
    c2 = lambda i: (0, 0)
    c3 = lambda i: (0, 0, 0)

    out = pl.pallas_call(
        kernel,
        out_shape=jax.ShapeDtypeStruct((B, 1, OUTPAD), jnp.float32),
        grid=(num_steps,),
        in_specs=[
            pl.BlockSpec((BB, Cin, HW), lambda i: (i, 0, 0)),   # x
            pl.BlockSpec((KK, HW), c2),                         # conv1 tap masks
            pl.BlockSpec((KK, Cloc, Cin), c3),                  # conv1 per-tap W
            pl.BlockSpec((Cloc, 1), c2),                        # conv1 bias
            pl.BlockSpec((HW, P), c2),                          # pool downsample
            pl.BlockSpec((KK, P, P), c3),                       # conv2 shift-select
            pl.BlockSpec((KK, Cloc, Cloc), c3),                 # conv2 per-tap W
            pl.BlockSpec((Cloc, 1), c2),                        # conv2 bias
            pl.BlockSpec((Cloc, OUTPAD), c2),                   # regressor W (padded)
            pl.BlockSpec((1, OUTPAD), c2),                      # regressor b (padded)
        ],
        out_specs=pl.BlockSpec((BB, 1, OUTPAD), lambda i: (i, 0, 0)),
        compiler_params=pltpu.CompilerParams(dimension_semantics=("parallel",)),
    )(x_flat, m1, w1_taps, b1_col, dsel, s2sel, w2_taps, b2_col, wr_pad, br_pad)

    return out[:, 0, :6].reshape(B, 2, 3)


# -------------------------- plain-JAX reference ------------------------------
def reference_forward(x_nchw, w1_oihw, b1, w2_oihw, b2, wr, br):
    def ln(y):
        mu = y.mean(axis=(1, 2, 3), keepdims=True)
        var = ((y - mu) ** 2).mean(axis=(1, 2, 3), keepdims=True)
        return (y - mu) * lax.rsqrt(var + EPS)

    dn = ('NCHW', 'OIHW', 'NCHW')
    y = lax.conv_general_dilated(x_nchw, w1_oihw, (1, 1), 'SAME', dimension_numbers=dn)
    y = y + b1.reshape(1, -1, 1, 1)
    y = jnp.maximum(ln(y), 0.0)
    y = lax.reduce_window(y, -jnp.inf, lax.max, (1, 1, 2, 2), (1, 1, 2, 2), 'VALID')
    y = lax.conv_general_dilated(y, w2_oihw, (1, 1), 'SAME', dimension_numbers=dn)
    y = y + b2.reshape(1, -1, 1, 1)
    y = jnp.maximum(ln(y), 0.0)
    g = y.mean(axis=(2, 3))
    out = g @ wr + br
    return out.reshape(x_nchw.shape[0], 2, 3)


# ---------------------------------- main -------------------------------------
if __name__ == "__main__":
    B, Cin, H, W = 2, 4, 16, 16
    Cloc, K = 8, 3

    key = jax.random.PRNGKey(0)
    k1, k2, k3, k4, k5, k6, kx = jax.random.split(key, 7)
    w1_oihw = 0.1 * jax.random.normal(k1, (Cloc, Cin, K, K), jnp.float32)
    b1 = 0.1 * jax.random.normal(k2, (Cloc,), jnp.float32)
    w2_oihw = 0.1 * jax.random.normal(k3, (Cloc, Cloc, K, K), jnp.float32)
    b2 = 0.1 * jax.random.normal(k4, (Cloc,), jnp.float32)
    wr = 0.1 * jax.random.normal(k5, (Cloc, 6), jnp.float32)
    br = 0.1 * jax.random.normal(k6, (6,), jnp.float32)
    x = jax.random.normal(kx, (B, Cin, H, W), jnp.float32)

    theta = localization_net_forward(x, w1_oihw, b1, w2_oihw, b2, wr, br, K)
    theta = jax.block_until_ready(theta)
    assert theta.shape == (B, 2, 3)

    ref = jax.block_until_ready(reference_forward(x, w1_oihw, b1, w2_oihw, b2, wr, br))
    np.testing.assert_allclose(np.asarray(theta), np.asarray(ref), rtol=1e-3, atol=1e-3)

    print("KERNEL_OK")
</pallas_src>

<mosaic_0001>
module attributes {stable_mosaic.version = 11 : i64} {
  func.func @kernel(%arg0: i32, %arg1: memref<1x4x256xf32, #tpu.memory_space<vmem>>, %arg2: memref<9x256xf32, #tpu.memory_space<vmem>>, %arg3: memref<9x8x4xf32, #tpu.memory_space<vmem>>, %arg4: memref<8x1xf32, #tpu.memory_space<vmem>>, %arg5: memref<256x64xf32, #tpu.memory_space<vmem>>, %arg6: memref<9x64x64xf32, #tpu.memory_space<vmem>>, %arg7: memref<9x8x8xf32, #tpu.memory_space<vmem>>, %arg8: memref<8x1xf32, #tpu.memory_space<vmem>>, %arg9: memref<8x128xf32, #tpu.memory_space<vmem>>, %arg10: memref<1x128xf32, #tpu.memory_space<vmem>>, %arg11: memref<1x1x128xf32, #tpu.memory_space<vmem>>) attributes {dimension_semantics = [#tpu.dimension_semantics<parallel>], iteration_bounds = array<i64: 2>, scalar_prefetch = 0 : i64, scratch_operands = 0 : i64, tpu.core_type = #tpu.core_type<tc>, window_params = [{transform_indices = @transform_0, window_bounds = array<i64: 1, 4, 256>}, {pipeline_mode = #tpu.pipeline_mode<synchronous>, transform_indices = @transform_1, window_bounds = array<i64: 9, 256>}, {pipeline_mode = #tpu.pipeline_mode<synchronous>, transform_indices = @transform_2, window_bounds = array<i64: 9, 8, 4>}, {pipeline_mode = #tpu.pipeline_mode<synchronous>, transform_indices = @transform_3, window_bounds = array<i64: 8, 1>}, {pipeline_mode = #tpu.pipeline_mode<synchronous>, transform_indices = @transform_4, window_bounds = array<i64: 256, 64>}, {pipeline_mode = #tpu.pipeline_mode<synchronous>, transform_indices = @transform_5, window_bounds = array<i64: 9, 64, 64>}, {pipeline_mode = #tpu.pipeline_mode<synchronous>, transform_indices = @transform_6, window_bounds = array<i64: 9, 8, 8>}, {pipeline_mode = #tpu.pipeline_mode<synchronous>, transform_indices = @transform_7, window_bounds = array<i64: 8, 1>}, {pipeline_mode = #tpu.pipeline_mode<synchronous>, transform_indices = @transform_8, window_bounds = array<i64: 8, 128>}, {pipeline_mode = #tpu.pipeline_mode<synchronous>, transform_indices = @transform_9, window_bounds = array<i64: 1, 128>}, {transform_indices = @transform_10, window_bounds = array<i64: 1, 1, 128>}]} {
    %c0 = arith.constant 0 : index
    %c0_0 = arith.constant 0 : index
    %0 = vector.load %arg2[%c0, %c0_0] : memref<9x256xf32, #tpu.memory_space<vmem>>, vector<9x256xf32>
    %c0_1 = arith.constant 0 : index
    %c0_2 = arith.constant 0 : index
    %c0_3 = arith.constant 0 : index
    %1 = vector.load %arg1[%c0_1, %c0_2, %c0_3] : memref<1x4x256xf32, #tpu.memory_space<vmem>>, vector<1x4x256xf32>
    %2 = vector.shape_cast %1 : vector<1x4x256xf32> to vector<4x256xf32>
    %cst = arith.constant 0.000000e+00 : f32
    %3 = vector.broadcast %cst : f32 to vector<8x256xf32>
    %c17_i32 = arith.constant 17 : i32
    %4 = tpu.dynamic_rotate %2 by %c17_i32 dim 1 : vector<4x256xf32>, i32 -> vector<4x256xf32>
    %5 = vector.extract_strided_slice %0 {offsets = [0, 0], sizes = [1, 256], strides = [1, 1]} : vector<9x256xf32> to vector<1x256xf32>
    %6 = vector.broadcast %5 : vector<1x256xf32> to vector<4x256xf32>
    %7 = arith.mulf %4, %6 : vector<4x256xf32>
    %c0_4 = arith.constant 0 : index
    %c0_5 = arith.constant 0 : index
    %c0_6 = arith.constant 0 : index
    %8 = vector.load %arg3[%c0_4, %c0_5, %c0_6] : memref<9x8x4xf32, #tpu.memory_space<vmem>>, vector<1x8x4xf32>
    %9 = vector.shape_cast %8 : vector<1x8x4xf32> to vector<8x4xf32>
    %cst_7 = arith.constant dense<0.000000e+00> : vector<8x256xf32>
    %10 = tpu.matmul %9, %7, %cst_7 {dimension_numbers = #tpu.dot_dimension_numbers<[1], [0], [0], [1], [0, 0, 1, 1], [], []>} : vector<8x4xf32>, vector<4x256xf32>, vector<8x256xf32> -> vector<8x256xf32>
    %11 = arith.addf %3, %10 : vector<8x256xf32>
    %c16_i32 = arith.constant 16 : i32
    %12 = tpu.dynamic_rotate %2 by %c16_i32 dim 1 : vector<4x256xf32>, i32 -> vector<4x256xf32>
    %13 = vector.extract_strided_slice %0 {offsets = [1, 0], sizes = [1, 256], strides = [1, 1]} : vector<9x256xf32> to vector<1x256xf32>
    %14 = vector.broadcast %13 : vector<1x256xf32> to vector<4x256xf32>
    %15 = arith.mulf %12, %14 : vector<4x256xf32>
    %c1 = arith.constant 1 : index
    %c0_8 = arith.constant 0 : index
    %c0_9 = arith.constant 0 : index
    %16 = vector.load %arg3[%c1, %c0_8, %c0_9] : memref<9x8x4xf32, #tpu.memory_space<vmem>>, vector<1x8x4xf32>
    %17 = vector.shape_cast %16 : vector<1x8x4xf32> to vector<8x4xf32>
    %cst_10 = arith.constant dense<0.000000e+00> : vector<8x256xf32>
    %18 = tpu.matmul %17, %15, %cst_10 {dimension_numbers = #tpu.dot_dimension_numbers<[1], [0], [0], [1], [0, 0, 1, 1], [], []>} : vector<8x4xf32>, vector<4x256xf32>, vector<8x256xf32> -> vector<8x256xf32>
    %19 = arith.addf %11, %18 : vector<8x256xf32>
    %c15_i32 = arith.constant 15 : i32
    %20 = tpu.dynamic_rotate %2 by %c15_i32 dim 1 : vector<4x256xf32>, i32 -> vector<4x256xf32>
    %21 = vector.extract_strided_slice %0 {offsets = [2, 0], sizes = [1, 256], strides = [1, 1]} : vector<9x256xf32> to vector<1x256xf32>
    %22 = vector.broadcast %21 : vector<1x256xf32> to vector<4x256xf32>
    %23 = arith.mulf %20, %22 : vector<4x256xf32>
    %c2 = arith.constant 2 : index
    %c0_11 = arith.constant 0 : index
    %c0_12 = arith.constant 0 : index
    %24 = vector.load %arg3[%c2, %c0_11, %c0_12] : memref<9x8x4xf32, #tpu.memory_space<vmem>>, vector<1x8x4xf32>
    %25 = vector.shape_cast %24 : vector<1x8x4xf32> to vector<8x4xf32>
    %cst_13 = arith.constant dense<0.000000e+00> : vector<8x256xf32>
    %26 = tpu.matmul %25, %23, %cst_13 {dimension_numbers = #tpu.dot_dimension_numbers<[1], [0], [0], [1], [0, 0, 1, 1], [], []>} : vector<8x4xf32>, vector<4x256xf32>, vector<8x256xf32> -> vector<8x256xf32>
    %27 = arith.addf %19, %26 : vector<8x256xf32>
    %c1_i32 = arith.constant 1 : i32
    %28 = tpu.dynamic_rotate %2 by %c1_i32 dim 1 : vector<4x256xf32>, i32 -> vector<4x256xf32>
    %29 = vector.extract_strided_slice %0 {offsets = [3, 0], sizes = [1, 256], strides = [1, 1]} : vector<9x256xf32> to vector<1x256xf32>
    %30 = vector.broadcast %29 : vector<1x256xf32> to vector<4x256xf32>
    %31 = arith.mulf %28, %30 : vector<4x256xf32>
    %c3 = arith.constant 3 : index
    %c0_14 = arith.constant 0 : index
    %c0_15 = arith.constant 0 : index
    %32 = vector.load %arg3[%c3, %c0_14, %c0_15] : memref<9x8x4xf32, #tpu.memory_space<vmem>>, vector<1x8x4xf32>
    %33 = vector.shape_cast %32 : vector<1x8x4xf32> to vector<8x4xf32>
    %cst_16 = arith.constant dense<0.000000e+00> : vector<8x256xf32>
    %34 = tpu.matmul %33, %31, %cst_16 {dimension_numbers = #tpu.dot_dimension_numbers<[1], [0], [0], [1], [0, 0, 1, 1], [], []>} : vector<8x4xf32>, vector<4x256xf32>, vector<8x256xf32> -> vector<8x256xf32>
    %35 = arith.addf %27, %34 : vector<8x256xf32>
    %36 = vector.extract_strided_slice %0 {offsets = [4, 0], sizes = [1, 256], strides = [1, 1]} : vector<9x256xf32> to vector<1x256xf32>
    %37 = vector.broadcast %36 : vector<1x256xf32> to vector<4x256xf32>
    %38 = arith.mulf %2, %37 : vector<4x256xf32>
    %c4 = arith.constant 4 : index
    %c0_17 = arith.constant 0 : index
    %c0_18 = arith.constant 0 : index
    %39 = vector.load %arg3[%c4, %c0_17, %c0_18] : memref<9x8x4xf32, #tpu.memory_space<vmem>>, vector<1x8x4xf32>
    %40 = vector.shape_cast %39 : vector<1x8x4xf32> to vector<8x4xf32>
    %cst_19 = arith.constant dense<0.000000e+00> : vector<8x256xf32>
    %41 = tpu.matmul %40, %38, %cst_19 {dimension_numbers = #tpu.dot_dimension_numbers<[1], [0], [0], [1], [0, 0, 1, 1], [], []>} : vector<8x4xf32>, vector<4x256xf32>, vector<8x256xf32> -> vector<8x256xf32>
    %42 = arith.addf %35, %41 : vector<8x256xf32>
    %c255_i32 = arith.constant 255 : i32
    %43 = tpu.dynamic_rotate %2 by %c255_i32 dim 1 : vector<4x256xf32>, i32 -> vector<4x256xf32>
    %44 = vector.extract_strided_slice %0 {offsets = [5, 0], sizes = [1, 256], strides = [1, 1]} : vector<9x256xf32> to vector<1x256xf32>
    %45 = vector.broadcast %44 : vector<1x256xf32> to vector<4x256xf32>
    %46 = arith.mulf %43, %45 : vector<4x256xf32>
    %c5 = arith.constant 5 : index
    %c0_20 = arith.constant 0 : index
    %c0_21 = arith.constant 0 : index
    %47 = vector.load %arg3[%c5, %c0_20, %c0_21] : memref<9x8x4xf32, #tpu.memory_space<vmem>>, vector<1x8x4xf32>
    %48 = vector.shape_cast %47 : vector<1x8x4xf32> to vector<8x4xf32>
    %cst_22 = arith.constant dense<0.000000e+00> : vector<8x256xf32>
    %49 = tpu.matmul %48, %46, %cst_22 {dimension_numbers = #tpu.dot_dimension_numbers<[1], [0], [0], [1], [0, 0, 1, 1], [], []>} : vector<8x4xf32>, vector<4x256xf32>, vector<8x256xf32> -> vector<8x256xf32>
    %50 = arith.addf %42, %49 : vector<8x256xf32>
    %c241_i32 = arith.constant 241 : i32
    %51 = tpu.dynamic_rotate %2 by %c241_i32 dim 1 : vector<4x256xf32>, i32 -> vector<4x256xf32>
    %52 = vector.extract_strided_slice %0 {offsets = [6, 0], sizes = [1, 256], strides = [1, 1]} : vector<9x256xf32> to vector<1x256xf32>
    %53 = vector.broadcast %52 : vector<1x256xf32> to vector<4x256xf32>
    %54 = arith.mulf %51, %53 : vector<4x256xf32>
    %c6 = arith.constant 6 : index
    %c0_23 = arith.constant 0 : index
    %c0_24 = arith.constant 0 : index
    %55 = vector.load %arg3[%c6, %c0_23, %c0_24] : memref<9x8x4xf32, #tpu.memory_space<vmem>>, vector<1x8x4xf32>
    %56 = vector.shape_cast %55 : vector<1x8x4xf32> to vector<8x4xf32>
    %cst_25 = arith.constant dense<0.000000e+00> : vector<8x256xf32>
    %57 = tpu.matmul %56, %54, %cst_25 {dimension_numbers = #tpu.dot_dimension_numbers<[1], [0], [0], [1], [0, 0, 1, 1], [], []>} : vector<8x4xf32>, vector<4x256xf32>, vector<8x256xf32> -> vector<8x256xf32>
    %58 = arith.addf %50, %57 : vector<8x256xf32>
    %c240_i32 = arith.constant 240 : i32
    %59 = tpu.dynamic_rotate %2 by %c240_i32 dim 1 : vector<4x256xf32>, i32 -> vector<4x256xf32>
    %60 = vector.extract_strided_slice %0 {offsets = [7, 0], sizes = [1, 256], strides = [1, 1]} : vector<9x256xf32> to vector<1x256xf32>
    %61 = vector.broadcast %60 : vector<1x256xf32> to vector<4x256xf32>
    %62 = arith.mulf %59, %61 : vector<4x256xf32>
    %c7 = arith.constant 7 : index
    %c0_26 = arith.constant 0 : index
    %c0_27 = arith.constant 0 : index
    %63 = vector.load %arg3[%c7, %c0_26, %c0_27] : memref<9x8x4xf32, #tpu.memory_space<vmem>>, vector<1x8x4xf32>
    %64 = vector.shape_cast %63 : vector<1x8x4xf32> to vector<8x4xf32>
    %cst_28 = arith.constant dense<0.000000e+00> : vector<8x256xf32>
    %65 = tpu.matmul %64, %62, %cst_28 {dimension_numbers = #tpu.dot_dimension_numbers<[1], [0], [0], [1], [0, 0, 1, 1], [], []>} : vector<8x4xf32>, vector<4x256xf32>, vector<8x256xf32> -> vector<8x256xf32>
    %66 = arith.addf %58, %65 : vector<8x256xf32>
    %c239_i32 = arith.constant 239 : i32
    %67 = tpu.dynamic_rotate %2 by %c239_i32 dim 1 : vector<4x256xf32>, i32 -> vector<4x256xf32>
    %68 = vector.extract_strided_slice %0 {offsets = [8, 0], sizes = [1, 256], strides = [1, 1]} : vector<9x256xf32> to vector<1x256xf32>
    %69 = vector.broadcast %68 : vector<1x256xf32> to vector<4x256xf32>
    %70 = arith.mulf %67, %69 : vector<4x256xf32>
    %c8 = arith.constant 8 : index
    %c0_29 = arith.constant 0 : index
    %c0_30 = arith.constant 0 : index
    %71 = vector.load %arg3[%c8, %c0_29, %c0_30] : memref<9x8x4xf32, #tpu.memory_space<vmem>>, vector<1x8x4xf32>
    %72 = vector.shape_cast %71 : vector<1x8x4xf32> to vector<8x4xf32>
    %cst_31 = arith.constant dense<0.000000e+00> : vector<8x256xf32>
    %73 = tpu.matmul %72, %70, %cst_31 {dimension_numbers = #tpu.dot_dimension_numbers<[1], [0], [0], [1], [0, 0, 1, 1], [], []>} : vector<8x4xf32>, vector<4x256xf32>, vector<8x256xf32> -> vector<8x256xf32>
    %74 = arith.addf %66, %73 : vector<8x256xf32>
    %c0_32 = arith.constant 0 : index
    %c0_33 = arith.constant 0 : index
    %75 = vector.load %arg4[%c0_32, %c0_33] : memref<8x1xf32, #tpu.memory_space<vmem>>, vector<8x1xf32>
    %76 = vector.broadcast %75 : vector<8x1xf32> to vector<8x256xf32>
    %77 = arith.addf %74, %76 : vector<8x256xf32>
    %78 = vector.shape_cast %77 : vector<8x256xf32> to vector<1x8x256xf32>
    %cst_34 = arith.constant dense<0.000000e+00> : vector<1xf32>
    %79 = vector.multi_reduction <add>, %78, %cst_34 [1, 2] : vector<1x8x256xf32> to vector<1xf32>
    %80 = vector.shape_cast %79 : vector<1xf32> to vector<1x1x1xf32>
    %81 = vector.extract %80[0, 0, 0] : f32 from vector<1x1x1xf32>
    %cst_35 = arith.constant 4.8828125E-4 : f32
    %82 = arith.mulf %81, %cst_35 : f32
    %83 = arith.mulf %77, %77 : vector<8x256xf32>
    %84 = vector.shape_cast %83 : vector<8x256xf32> to vector<1x8x256xf32>
    %cst_36 = arith.constant dense<0.000000e+00> : vector<1xf32>
    %85 = vector.multi_reduction <add>, %84, %cst_36 [1, 2] : vector<1x8x256xf32> to vector<1xf32>
    %86 = vector.shape_cast %85 : vector<1xf32> to vector<1x1x1xf32>
    %87 = vector.extract %86[0, 0, 0] : f32 from vector<1x1x1xf32>
    %cst_37 = arith.constant 4.8828125E-4 : f32
    %88 = arith.mulf %87, %cst_37 : f32
    %89 = arith.mulf %82, %82 : f32
    %90 = arith.subf %88, %89 : f32
    %91 = vector.broadcast %82 : f32 to vector<8x256xf32>
    %92 = arith.subf %77, %91 : vector<8x256xf32>
    %cst_38 = arith.constant 9.99999974E-6 : f32
    %93 = arith.addf %90, %cst_38 : f32
    %94 = math.rsqrt %93 : f32
    %95 = vector.broadcast %94 : f32 to vector<8x256xf32>
    %96 = arith.mulf %92, %95 : vector<8x256xf32>
    %cst_39 = arith.constant 0.000000e+00 : f32
    %97 = vector.broadcast %cst_39 : f32 to vector<8x256xf32>
    %98 = arith.maximumf %96, %97 : vector<8x256xf32>
    %c255_i32_40 = arith.constant 255 : i32
    %99 = tpu.dynamic_rotate %98 by %c255_i32_40 dim 1 : vector<8x256xf32>, i32 -> vector<8x256xf32>
    %100 = arith.maximumf %98, %99 : vector<8x256xf32>
    %c240_i32_41 = arith.constant 240 : i32
    %101 = tpu.dynamic_rotate %98 by %c240_i32_41 dim 1 : vector<8x256xf32>, i32 -> vector<8x256xf32>
    %102 = arith.maximumf %100, %101 : vector<8x256xf32>
    %c239_i32_42 = arith.constant 239 : i32
    %103 = tpu.dynamic_rotate %98 by %c239_i32_42 dim 1 : vector<8x256xf32>, i32 -> vector<8x256xf32>
    %104 = arith.maximumf %102, %103 : vector<8x256xf32>
    %c0_43 = arith.constant 0 : index
    %c0_44 = arith.constant 0 : index
    %105 = vector.load %arg5[%c0_43, %c0_44] : memref<256x64xf32, #tpu.memory_space<vmem>>, vector<256x64xf32>
    %cst_45 = arith.constant dense<0.000000e+00> : vector<8x64xf32>
    %106 = tpu.matmul %104, %105, %cst_45 {dimension_numbers = #tpu.dot_dimension_numbers<[1], [0], [0], [1], [0, 0, 1, 1], [], []>} : vector<8x256xf32>, vector<256x64xf32>, vector<8x64xf32> -> vector<8x64xf32>
    %cst_46 = arith.constant 0.000000e+00 : f32
    %107 = vector.broadcast %cst_46 : f32 to vector<8x64xf32>
    %c0_47 = arith.constant 0 : index
    %c0_48 = arith.constant 0 : index
    %c0_49 = arith.constant 0 : index
    %108 = vector.load %arg6[%c0_47, %c0_48, %c0_49] : memref<9x64x64xf32, #tpu.memory_space<vmem>>, vector<1x64x64xf32>
    %109 = vector.shape_cast %108 : vector<1x64x64xf32> to vector<64x64xf32>
    %cst_50 = arith.constant dense<0.000000e+00> : vector<8x64xf32>
    %110 = tpu.matmul %106, %109, %cst_50 {dimension_numbers = #tpu.dot_dimension_numbers<[1], [0], [0], [1], [0, 0, 1, 1], [], []>} : vector<8x64xf32>, vector<64x64xf32>, vector<8x64xf32> -> vector<8x64xf32>
    %c0_51 = arith.constant 0 : index
    %c0_52 = arith.constant 0 : index
    %c0_53 = arith.constant 0 : index
    %111 = vector.load %arg7[%c0_51, %c0_52, %c0_53] : memref<9x8x8xf32, #tpu.memory_space<vmem>>, vector<1x8x8xf32>
    %112 = vector.shape_cast %111 : vector<1x8x8xf32> to vector<8x8xf32>
    %cst_54 = arith.constant dense<0.000000e+00> : vector<8x64xf32>
    %113 = tpu.matmul %112, %110, %cst_54 {dimension_numbers = #tpu.dot_dimension_numbers<[1], [0], [0], [1], [0, 0, 1, 1], [], []>} : vector<8x8xf32>, vector<8x64xf32>, vector<8x64xf32> -> vector<8x64xf32>
    %114 = arith.addf %107, %113 : vector<8x64xf32>
    %c1_55 = arith.constant 1 : index
    %c0_56 = arith.constant 0 : index
    %c0_57 = arith.constant 0 : index
    %115 = vector.load %arg6[%c1_55, %c0_56, %c0_57] : memref<9x64x64xf32, #tpu.memory_space<vmem>>, vector<1x64x64xf32>
    %116 = vector.shape_cast %115 : vector<1x64x64xf32> to vector<64x64xf32>
    %cst_58 = arith.constant dense<0.000000e+00> : vector<8x64xf32>
    %117 = tpu.matmul %106, %116, %cst_58 {dimension_numbers = #tpu.dot_dimension_numbers<[1], [0], [0], [1], [0, 0, 1, 1], [], []>} : vector<8x64xf32>, vector<64x64xf32>, vector<8x64xf32> -> vector<8x64xf32>
    %c1_59 = arith.constant 1 : index
    %c0_60 = arith.constant 0 : index
    %c0_61 = arith.constant 0 : index
    %118 = vector.load %arg7[%c1_59, %c0_60, %c0_61] : memref<9x8x8xf32, #tpu.memory_space<vmem>>, vector<1x8x8xf32>
    %119 = vector.shape_cast %118 : vector<1x8x8xf32> to vector<8x8xf32>
    %cst_62 = arith.constant dense<0.000000e+00> : vector<8x64xf32>
    %120 = tpu.matmul %119, %117, %cst_62 {dimension_numbers = #tpu.dot_dimension_numbers<[1], [0], [0], [1], [0, 0, 1, 1], [], []>} : vector<8x8xf32>, vector<8x64xf32>, vector<8x64xf32> -> vector<8x64xf32>
    %121 = arith.addf %114, %120 : vector<8x64xf32>
    %c2_63 = arith.constant 2 : index
    %c0_64 = arith.constant 0 : index
    %c0_65 = arith.constant 0 : index
    %122 = vector.load %arg6[%c2_63, %c0_64, %c0_65] : memref<9x64x64xf32, #tpu.memory_space<vmem>>, vector<1x64x64xf32>
    %123 = vector.shape_cast %122 : vector<1x64x64xf32> to vector<64x64xf32>
    %cst_66 = arith.constant dense<0.000000e+00> : vector<8x64xf32>
    %124 = tpu.matmul %106, %123, %cst_66 {dimension_numbers = #tpu.dot_dimension_numbers<[1], [0], [0], [1], [0, 0, 1, 1], [], []>} : vector<8x64xf32>, vector<64x64xf32>, vector<8x64xf32> -> vector<8x64xf32>
    %c2_67 = arith.constant 2 : index
    %c0_68 = arith.constant 0 : index
    %c0_69 = arith.constant 0 : index
    %125 = vector.load %arg7[%c2_67, %c0_68, %c0_69] : memref<9x8x8xf32, #tpu.memory_space<vmem>>, vector<1x8x8xf32>
    %126 = vector.shape_cast %125 : vector<1x8x8xf32> to vector<8x8xf32>
    %cst_70 = arith.constant dense<0.000000e+00> : vector<8x64xf32>
    %127 = tpu.matmul %126, %124, %cst_70 {dimension_numbers = #tpu.dot_dimension_numbers<[1], [0], [0], [1], [0, 0, 1, 1], [], []>} : vector<8x8xf32>, vector<8x64xf32>, vector<8x64xf32> -> vector<8x64xf32>
    %128 = arith.addf %121, %127 : vector<8x64xf32>
    %c3_71 = arith.constant 3 : index
    %c0_72 = arith.constant 0 : index
    %c0_73 = arith.constant 0 : index
    %129 = vector.load %arg6[%c3_71, %c0_72, %c0_73] : memref<9x64x64xf32, #tpu.memory_space<vmem>>, vector<1x64x64xf32>
    %130 = vector.shape_cast %129 : vector<1x64x64xf32> to vector<64x64xf32>
    %cst_74 = arith.constant dense<0.000000e+00> : vector<8x64xf32>
    %131 = tpu.matmul %106, %130, %cst_74 {dimension_numbers = #tpu.dot_dimension_numbers<[1], [0], [0], [1], [0, 0, 1, 1], [], []>} : vector<8x64xf32>, vector<64x64xf32>, vector<8x64xf32> -> vector<8x64xf32>
    %c3_75 = arith.constant 3 : index
    %c0_76 = arith.constant 0 : index
    %c0_77 = arith.constant 0 : index
    %132 = vector.load %arg7[%c3_75, %c0_76, %c0_77] : memref<9x8x8xf32, #tpu.memory_space<vmem>>, vector<1x8x8xf32>
    %133 = vector.shape_cast %132 : vector<1x8x8xf32> to vector<8x8xf32>
    %cst_78 = arith.constant dense<0.000000e+00> : vector<8x64xf32>
    %134 = tpu.matmul %133, %131, %cst_78 {dimension_numbers = #tpu.dot_dimension_numbers<[1], [0], [0], [1], [0, 0, 1, 1], [], []>} : vector<8x8xf32>, vector<8x64xf32>, vector<8x64xf32> -> vector<8x64xf32>
    %135 = arith.addf %128, %134 : vector<8x64xf32>
    %c4_79 = arith.constant 4 : index
    %c0_80 = arith.constant 0 : index
    %c0_81 = arith.constant 0 : index
    %136 = vector.load %arg6[%c4_79, %c0_80, %c0_81] : memref<9x64x64xf32, #tpu.memory_space<vmem>>, vector<1x64x64xf32>
    %137 = vector.shape_cast %136 : vector<1x64x64xf32> to vector<64x64xf32>
    %cst_82 = arith.constant dense<0.000000e+00> : vector<8x64xf32>
    %138 = tpu.matmul %106, %137, %cst_82 {dimension_numbers = #tpu.dot_dimension_numbers<[1], [0], [0], [1], [0, 0, 1, 1], [], []>} : vector<8x64xf32>, vector<64x64xf32>, vector<8x64xf32> -> vector<8x64xf32>
    %c4_83 = arith.constant 4 : index
    %c0_84 = arith.constant 0 : index
    %c0_85 = arith.constant 0 : index
    %139 = vector.load %arg7[%c4_83, %c0_84, %c0_85] : memref<9x8x8xf32, #tpu.memory_space<vmem>>, vector<1x8x8xf32>
    %140 = vector.shape_cast %139 : vector<1x8x8xf32> to vector<8x8xf32>
    %cst_86 = arith.constant dense<0.000000e+00> : vector<8x64xf32>
    %141 = tpu.matmul %140, %138, %cst_86 {dimension_numbers = #tpu.dot_dimension_numbers<[1], [0], [0], [1], [0, 0, 1, 1], [], []>} : vector<8x8xf32>, vector<8x64xf32>, vector<8x64xf32> -> vector<8x64xf32>
    %142 = arith.addf %135, %141 : vector<8x64xf32>
    %c5_87 = arith.constant 5 : index
    %c0_88 = arith.constant 0 : index
    %c0_89 = arith.constant 0 : index
    %143 = vector.load %arg6[%c5_87, %c0_88, %c0_89] : memref<9x64x64xf32, #tpu.memory_space<vmem>>, vector<1x64x64xf32>
    %144 = vector.shape_cast %143 : vector<1x64x64xf32> to vector<64x64xf32>
    %cst_90 = arith.constant dense<0.000000e+00> : vector<8x64xf32>
    %145 = tpu.matmul %106, %144, %cst_90 {dimension_numbers = #tpu.dot_dimension_numbers<[1], [0], [0], [1], [0, 0, 1, 1], [], []>} : vector<8x64xf32>, vector<64x64xf32>, vector<8x64xf32> -> vector<8x64xf32>
    %c5_91 = arith.constant 5 : index
    %c0_92 = arith.constant 0 : index
    %c0_93 = arith.constant 0 : index
    %146 = vector.load %arg7[%c5_91, %c0_92, %c0_93] : memref<9x8x8xf32, #tpu.memory_space<vmem>>, vector<1x8x8xf32>
    %147 = vector.shape_cast %146 : vector<1x8x8xf32> to vector<8x8xf32>
    %cst_94 = arith.constant dense<0.000000e+00> : vector<8x64xf32>
    %148 = tpu.matmul %147, %145, %cst_94 {dimension_numbers = #tpu.dot_dimension_numbers<[1], [0], [0], [1], [0, 0, 1, 1], [], []>} : vector<8x8xf32>, vector<8x64xf32>, vector<8x64xf32> -> vector<8x64xf32>
    %149 = arith.addf %142, %148 : vector<8x64xf32>
    %c6_95 = arith.constant 6 : index
    %c0_96 = arith.constant 0 : index
    %c0_97 = arith.constant 0 : index
    %150 = vector.load %arg6[%c6_95, %c0_96, %c0_97] : memref<9x64x64xf32, #tpu.memory_space<vmem>>, vector<1x64x64xf32>
    %151 = vector.shape_cast %150 : vector<1x64x64xf32> to vector<64x64xf32>
    %cst_98 = arith.constant dense<0.000000e+00> : vector<8x64xf32>
    %152 = tpu.matmul %106, %151, %cst_98 {dimension_numbers = #tpu.dot_dimension_numbers<[1], [0], [0], [1], [0, 0, 1, 1], [], []>} : vector<8x64xf32>, vector<64x64xf32>, vector<8x64xf32> -> vector<8x64xf32>
    %c6_99 = arith.constant 6 : index
    %c0_100 = arith.constant 0 : index
    %c0_101 = arith.constant 0 : index
    %153 = vector.load %arg7[%c6_99, %c0_100, %c0_101] : memref<9x8x8xf32, #tpu.memory_space<vmem>>, vector<1x8x8xf32>
    %154 = vector.shape_cast %153 : vector<1x8x8xf32> to vector<8x8xf32>
    %cst_102 = arith.constant dense<0.000000e+00> : vector<8x64xf32>
    %155 = tpu.matmul %154, %152, %cst_102 {dimension_numbers = #tpu.dot_dimension_numbers<[1], [0], [0], [1], [0, 0, 1, 1], [], []>} : vector<8x8xf32>, vector<8x64xf32>, vector<8x64xf32> -> vector<8x64xf32>
    %156 = arith.addf %149, %155 : vector<8x64xf32>
    %c7_103 = arith.constant 7 : index
    %c0_104 = arith.constant 0 : index
    %c0_105 = arith.constant 0 : index
    %157 = vector.load %arg6[%c7_103, %c0_104, %c0_105] : memref<9x64x64xf32, #tpu.memory_space<vmem>>, vector<1x64x64xf32>
    %158 = vector.shape_cast %157 : vector<1x64x64xf32> to vector<64x64xf32>
    %cst_106 = arith.constant dense<0.000000e+00> : vector<8x64xf32>
    %159 = tpu.matmul %106, %158, %cst_106 {dimension_numbers = #tpu.dot_dimension_numbers<[1], [0], [0], [1], [0, 0, 1, 1], [], []>} : vector<8x64xf32>, vector<64x64xf32>, vector<8x64xf32> -> vector<8x64xf32>
    %c7_107 = arith.constant 7 : index
    %c0_108 = arith.constant 0 : index
    %c0_109 = arith.constant 0 : index
    %160 = vector.load %arg7[%c7_107, %c0_108, %c0_109] : memref<9x8x8xf32, #tpu.memory_space<vmem>>, vector<1x8x8xf32>
    %161 = vector.shape_cast %160 : vector<1x8x8xf32> to vector<8x8xf32>
    %cst_110 = arith.constant dense<0.000000e+00> : vector<8x64xf32>
    %162 = tpu.matmul %161, %159, %cst_110 {dimension_numbers = #tpu.dot_dimension_numbers<[1], [0], [0], [1], [0, 0, 1, 1], [], []>} : vector<8x8xf32>, vector<8x64xf32>, vector<8x64xf32> -> vector<8x64xf32>
    %163 = arith.addf %156, %162 : vector<8x64xf32>
    %c8_111 = arith.constant 8 : index
    %c0_112 = arith.constant 0 : index
    %c0_113 = arith.constant 0 : index
    %164 = vector.load %arg6[%c8_111, %c0_112, %c0_113] : memref<9x64x64xf32, #tpu.memory_space<vmem>>, vector<1x64x64xf32>
    %165 = vector.shape_cast %164 : vector<1x64x64xf32> to vector<64x64xf32>
    %cst_114 = arith.constant dense<0.000000e+00> : vector<8x64xf32>
    %166 = tpu.matmul %106, %165, %cst_114 {dimension_numbers = #tpu.dot_dimension_numbers<[1], [0], [0], [1], [0, 0, 1, 1], [], []>} : vector<8x64xf32>, vector<64x64xf32>, vector<8x64xf32> -> vector<8x64xf32>
    %c8_115 = arith.constant 8 : index
    %c0_116 = arith.constant 0 : index
    %c0_117 = arith.constant 0 : index
    %167 = vector.load %arg7[%c8_115, %c0_116, %c0_117] : memref<9x8x8xf32, #tpu.memory_space<vmem>>, vector<1x8x8xf32>
    %168 = vector.shape_cast %167 : vector<1x8x8xf32> to vector<8x8xf32>
    %cst_118 = arith.constant dense<0.000000e+00> : vector<8x64xf32>
    %169 = tpu.matmul %168, %166, %cst_118 {dimension_numbers = #tpu.dot_dimension_numbers<[1], [0], [0], [1], [0, 0, 1, 1], [], []>} : vector<8x8xf32>, vector<8x64xf32>, vector<8x64xf32> -> vector<8x64xf32>
    %170 = arith.addf %163, %169 : vector<8x64xf32>
    %c0_119 = arith.constant 0 : index
    %c0_120 = arith.constant 0 : index
    %171 = vector.load %arg8[%c0_119, %c0_120] : memref<8x1xf32, #tpu.memory_space<vmem>>, vector<8x1xf32>
    %172 = vector.broadcast %171 : vector<8x1xf32> to vector<8x64xf32>
    %173 = arith.addf %170, %172 : vector<8x64xf32>
    %174 = vector.shape_cast %173 : vector<8x64xf32> to vector<1x8x64xf32>
    %cst_121 = arith.constant dense<0.000000e+00> : vector<1xf32>
    %175 = vector.multi_reduction <add>, %174, %cst_121 [1, 2] : vector<1x8x64xf32> to vector<1xf32>
    %176 = vector.shape_cast %175 : vector<1xf32> to vector<1x1x1xf32>
    %177 = vector.extract %176[0, 0, 0] : f32 from vector<1x1x1xf32>
    %cst_122 = arith.constant 0.001953125 : f32
    %178 = arith.mulf %177, %cst_122 : f32
    %179 = arith.mulf %173, %173 : vector<8x64xf32>
    %180 = vector.shape_cast %179 : vector<8x64xf32> to vector<1x8x64xf32>
    %cst_123 = arith.constant dense<0.000000e+00> : vector<1xf32>
    %181 = vector.multi_reduction <add>, %180, %cst_123 [1, 2] : vector<1x8x64xf32> to vector<1xf32>
    %182 = vector.shape_cast %181 : vector<1xf32> to vector<1x1x1xf32>
    %183 = vector.extract %182[0, 0, 0] : f32 from vector<1x1x1xf32>
    %cst_124 = arith.constant 0.001953125 : f32
    %184 = arith.mulf %183, %cst_124 : f32
    %185 = arith.mulf %178, %178 : f32
    %186 = arith.subf %184, %185 : f32
    %187 = vector.broadcast %178 : f32 to vector<8x64xf32>
    %188 = arith.subf %173, %187 : vector<8x64xf32>
    %cst_125 = arith.constant 9.99999974E-6 : f32
    %189 = arith.addf %186, %cst_125 : f32
    %190 = math.rsqrt %189 : f32
    %191 = vector.broadcast %190 : f32 to vector<8x64xf32>
    %192 = arith.mulf %188, %191 : vector<8x64xf32>
    %cst_126 = arith.constant 0.000000e+00 : f32
    %193 = vector.broadcast %cst_126 : f32 to vector<8x64xf32>
    %194 = arith.maximumf %192, %193 : vector<8x64xf32>
    %cst_127 = arith.constant dense<0.000000e+00> : vector<8xf32>
    %195 = vector.multi_reduction <add>, %194, %cst_127 [1] : vector<8x64xf32> to vector<8xf32>
    %196 = vector.shape_cast %195 : vector<8xf32> to vector<8x1xf32>
    %cst_128 = arith.constant 1.562500e-02 : f32
    %197 = vector.broadcast %cst_128 : f32 to vector<8x1xf32>
    %198 = arith.mulf %196, %197 : vector<8x1xf32>
    %c0_129 = arith.constant 0 : index
    %c0_130 = arith.constant 0 : index
    %199 = vector.load %arg9[%c0_129, %c0_130] : memref<8x128xf32, #tpu.memory_space<vmem>>, vector<8x128xf32>
    %200 = vector.broadcast %198 : vector<8x1xf32> to vector<8x128xf32>
    %201 = arith.mulf %200, %199 : vector<8x128xf32>
    %cst_131 = arith.constant dense<0.000000e+00> : vector<128xf32>
    %202 = vector.multi_reduction <add>, %201, %cst_131 [0] : vector<8x128xf32> to vector<128xf32>
    %203 = vector.shape_cast %202 : vector<128xf32> to vector<1x128xf32>
    %c0_132 = arith.constant 0 : index
    %c0_133 = arith.constant 0 : index
    %204 = vector.load %arg10[%c0_132, %c0_133] : memref<1x128xf32, #tpu.memory_space<vmem>>, vector<1x128xf32>
    %205 = arith.addf %203, %204 : vector<1x128xf32>
    %c0_134 = arith.constant 0 : index
    %c0_135 = arith.constant 0 : index
    %c0_136 = arith.constant 0 : index
    %206 = vector.load %arg11[%c0_134, %c0_135, %c0_136] : memref<1x1x128xf32, #tpu.memory_space<vmem>>, vector<1x1x128xf32>
    %207 = vector.shape_cast %206 : vector<1x1x128xf32> to vector<1x128xf32>
    %208 = vector.shape_cast %205 : vector<1x128xf32> to vector<1x1x128xf32>
    tpu.vector_store %arg11[%c0_134, %c0_135, %c0_136], %208 {strides = array<i32>} : memref<1x1x128xf32, #tpu.memory_space<vmem>>, vector<1x1x128xf32>,
    return
  }
  func.func @transform_0(%arg0: i32) -> (i32, i32, i32) {
    %c0_i32 = arith.constant 0 : i32
    %c0_i32_0 = arith.constant 0 : i32
    %c0_i32_1 = arith.constant 0 : i32
    return %arg0, %c0_i32, %c0_i32_0 : i32, i32, i32
  }
  func.func @transform_1(%arg0: i32) -> (i32, i32) {
    %c0_i32 = arith.constant 0 : i32
    %c0_i32_0 = arith.constant 0 : i32
    %c0_i32_1 = arith.constant 0 : i32
    return %c0_i32, %c0_i32_0 : i32, i32
  }
  func.func @transform_2(%arg0: i32) -> (i32, i32, i32) {
    %c0_i32 = arith.constant 0 : i32
    %c0_i32_0 = arith.constant 0 : i32
    %c0_i32_1 = arith.constant 0 : i32
    %c0_i32_2 = arith.constant 0 : i32
    return %c0_i32, %c0_i32_0, %c0_i32_1 : i32, i32, i32
  }
  func.func @transform_3(%arg0: i32) -> (i32, i32) {
    %c0_i32 = arith.constant 0 : i32
    %c0_i32_0 = arith.constant 0 : i32
    %c0_i32_1 = arith.constant 0 : i32
    return %c0_i32, %c0_i32_0 : i32, i32
  }
  func.func @transform_4(%arg0: i32) -> (i32, i32) {
    %c0_i32 = arith.constant 0 : i32
    %c0_i32_0 = arith.constant 0 : i32
    %c0_i32_1 = arith.constant 0 : i32
    return %c0_i32, %c0_i32_0 : i32, i32
  }
  func.func @transform_5(%arg0: i32) -> (i32, i32, i32) {
    %c0_i32 = arith.constant 0 : i32
    %c0_i32_0 = arith.constant 0 : i32
    %c0_i32_1 = arith.constant 0 : i32
    %c0_i32_2 = arith.constant 0 : i32
    return %c0_i32, %c0_i32_0, %c0_i32_1 : i32, i32, i32
  }
  func.func @transform_6(%arg0: i32) -> (i32, i32, i32) {
    %c0_i32 = arith.constant 0 : i32
    %c0_i32_0 = arith.constant 0 : i32
    %c0_i32_1 = arith.constant 0 : i32
    %c0_i32_2 = arith.constant 0 : i32
    return %c0_i32, %c0_i32_0, %c0_i32_1 : i32, i32, i32
  }
  func.func @transform_7(%arg0: i32) -> (i32, i32) {
    %c0_i32 = arith.constant 0 : i32
    %c0_i32_0 = arith.constant 0 : i32
    %c0_i32_1 = arith.constant 0 : i32
    return %c0_i32, %c0_i32_0 : i32, i32
  }
  func.func @transform_8(%arg0: i32) -> (i32, i32) {
    %c0_i32 = arith.constant 0 : i32
    %c0_i32_0 = arith.constant 0 : i32
    %c0_i32_1 = arith.constant 0 : i32
    return %c0_i32, %c0_i32_0 : i32, i32
  }
  func.func @transform_9(%arg0: i32) -> (i32, i32) {
    %c0_i32 = arith.constant 0 : i32
    %c0_i32_0 = arith.constant 0 : i32
    %c0_i32_1 = arith.constant 0 : i32
    return %c0_i32, %c0_i32_0 : i32, i32
  }
  func.func @transform_10(%arg0: i32) -> (i32, i32, i32) {
    %c0_i32 = arith.constant 0 : i32
    %c0_i32_0 = arith.constant 0 : i32
    %c0_i32_1 = arith.constant 0 : i32
    return %arg0, %c0_i32, %c0_i32_0 : i32, i32, i32
  }
}

</mosaic_0001>

<bundles_post_ra>
// kernel: tpu_custom_call.1
= control target key start
LH: loop header
LB: loop body
LE: loop exit
PB: predicated region body
PF: predicated region fallthrough
CT: control target
= control target key end

     0   :  { %s2549_s0 = inlined_call_operand.vmem [shape: f32[2,4,256], index: 0, kind: input, shape index: {}]   ;;  %s2550_s1 = inlined_call_operand.vmem [shape: f32[9,256], index: 1, kind: input, shape index: {}]   ;;  %s2551_s2 = inlined_call_operand.vmem [shape: f32[9,8,4], index: 2, kind: input, shape index: {}]   ;;  %s2552_s3 = inlined_call_operand.vmem [shape: f32[8,1], index: 3, kind: input, shape index: {}]   ;;  %s2553_s4 = inlined_call_operand.vmem [shape: f32[256,64], index: 4, kind: input, shape index: {}]   ;;  %s2554_s5 = inlined_call_operand.hbm [shape: f32[9,64,64], index: 5, kind: input, shape index: {}]   ;;  %s2555_s6 = inlined_call_operand.vmem [shape: f32[9,8,8], index: 6, kind: input, shape index: {}]   ;;  %s2556_s7 = inlined_call_operand.vmem [shape: f32[8,1], index: 7, kind: input, shape index: {}]   ;;  %s2557_s8 = inlined_call_operand.vmem [shape: f32[8,128], index: 8, kind: input, shape index: {}]   ;;  %s2558_s9 = inlined_call_operand.vmem [shape: f32[1,128], index: 9, kind: input, shape index: {}]   ;;  %s2559_s10 = inlined_call_operand.hbm [shape: f32[2,1,128], index: 10, kind: output, shape index: {}]  }
   0x1   :  { %2561 = sst [smem:[#allocation8_spill]] %s2549_s0 }
   0x2   :  { %15 = vsyncpa [#allocation3], 0 }
   0x3   :  { %16 = vsyncpa [#allocation4], 0 }
   0x4   :  { %18 = vsyncpa [#allocation4 + $0x1], 0  ;;  %s2128_s13 = smov 0   ;;  %s2130_s14 = smov 0  }
   0x5   :  { %s2132_s15 = smov 0   ;;  %s2134_s16 = smov 0  }
   0x6 LB: > { %s2149_s17 = sadd.s32 4294967295, %s2059_s16   ;;  %s1786_s18 = sadd.s32 4294967294, %s2059_s16   ;;  %s2059_s16 = sphi %s2134_s16, %s2569_s16   ;;  %s2055_s15 = sphi %s2132_s15, %s2568_s15   ;;  %s2051_s14 = sphi %s2130_s14, %s2567_s14   ;;  %s2047_s13 = sphi %s2128_s13, %s2566_s13  }
   0x7   : > { %s2153_s19 = sadd.s32 1, %s2059_s16   ;;  %s246_s20 = sadd.s32 1, %s2055_s15 }
   0x8   : > { %s243_s21 = ssub.s32 %s2059_s16, %s2153_s19  ;;  %p256_p0 = scmp.ne.s32.totalorder %s2055_s15, %s2051_s14 }
   0x9   : > { %p244_p1 = scmp.eq.s32.totalorder %s243_s21, 0  ;;  %p257_p2 = scmp.eq.s32.totalorder %s2149_s17, 1 }
   0xa   : > { %p262_p3 = scmp.ne.s32.totalorder %s2051_s14, %s2047_s13  ;;  %p263_p4 = scmp.eq.s32.totalorder %s1786_s18, 1 }
   0xb   : > { %s2164_s22 = scalar_select %p244_p1, %s2055_s15, %s246_s20  }
   0xc   : > { %p2166_p5 = por %p257_p2, %p256_p0  ;;  %p2170_p6 = por %p263_p4, %p262_p3 }
   0xd   : > { %p1787_p7 = scmp.ge.s32.totalorder %s2059_s16, 1  ;;  %p270_p8 = scmp.lt.s32.totalorder %s2059_s16, 3 }
   0xe   : > { %p1893_p9 = scmp.eq.s32.totalorder %s2149_s17, 0  ;;  %s293_s27 = sshll.u32 %s2554_s5, 4  ;;  %s294_s27 = int_to_ptr.hbm [resolvable:$true] %s293_s27 }
   0xf   : > { %p271_p10 = pnand %p1787_p7, %p270_p8  ;;  %s2061_s28 = smov [#allocation2]  }
  0x10   : > { %s295_s29 = sshll.u32 %s2061_s28, 4  ;;  %s2062_s30 = smov 128   ;;  %s296_s29 = int_to_ptr.vmem [resolvable:$true] %s295_s29 }
  0x11   : > { %p1885_p11 = pneg %p271_p10  ;;  %s2063_s11 = smov 8  }
  0x12   : > { %331 = sbr.rel (%p271_p10) target bundleno = 2129 (0x851), region = 60 }
  0x13   : > { %p1886_p12 = pnand %p1893_p9, %p1885_p11 }
  0x15   : > { %1888 = dma.hbm_to_vmem [thread:$0]  (!%p1886_p12), %s294_s27, 9216, %s296_s29, [#allocation3], %s2062_s30, %s2062_s30, %s2063_s11  }
  0x17   : > { %2038 = dma.done.wait (%p1893_p9), [#allocation3], 9216  }
  0x18   : > { %2040 = vsyncadd (%p1893_p9), [#allocation3], 4294958080  ;;  %p369_p13 = scmp.lt.s32.totalorder %s2149_s17, 1  ;;  %s2564_s0 = sld [smem:[#allocation8_spill]]  ;;  %v2194_v3 = vld [vmem:[%s2550_s1 + $0x8] sm:$0xff]  ;;  %v2200_v7 = vld [vmem:[%s2550_s1] sm:$0xff]  ;;  %v389_v26 = vlaneseq }
  0x19   : > { %s2064_s26 = smov 17   ;;  %s2065_s29 = smov 16   ;;  %v656_v6 = vperm.slane %v2194_v3, 4  ;;  %v655_v8 = vperm.slane %v2200_v7, 4  ;;  %vm421_vm0 = vcmask 1043456   ;;  %v394_v30 = vperm.slane %v2200_v7, 0 }
  0x1a   : > { %s370_s12 = scalar_select %p369_p13, %s2149_s17, 1  ;;  %v2214_v28 = vand.u32 127, %v389_v26  ;;  %v395_v31 = vperm.slane %v2194_v3, 0  ;;  %vm417_vm2 = vcmask 31744   ;;  %v398_v38 = vld [vmem:[%s2551_s2] sm:$0xff]  ;;  %v411_v40 = vperm.slane %v2200_v7, 1 }
  0x1b   : > { %v659_v9 = vrot.slane %v656_v6, 4  ;;  %s2068_s20 = smov 127   ;;  %s2069_s21 = smov 113   ;;  %v412_v41 = vperm.slane %v2194_v3, 1  ;;  %v529_v42 = vperm.slane %v2200_v7, 2  ;;  %v530_v43 = vperm.slane %v2194_v3, 2 }
  0x1c   : > { %s1866_s18 = sshll.u32 %s370_s12, 3  ;;  %s2066_s12 = smov 15   ;;  %vm391_vm1 = vcmp.lt.s32.totalorder %v2214_v28, 17  ;;  %vm526_vm3 = vcmp.lt.s32.totalorder %v2214_v28, 15  ;;  %vm408_vm4 = vcmp.lt.s32.totalorder %v2214_v28, 16  ;;  %v1794_v51 = vld [vmem:[%s2551_s2 + $0x8] sm:$0xff] }
  0x1d   : > { %v660_v12 = vsel %vm421_vm0, %v655_v8, %v659_v9  ;;  %vm595_vm5 = vcmp.lt.s32.totalorder %v2214_v28, 1  ;;  %v598_v54 = vperm.slane %v2200_v7, 3  ;;  %v599_v55 = vperm.slane %v2194_v3, 3  ;;  %v1803_v62 = vld [vmem:[%s2551_s2 + $0x10] sm:$0xff]  ;;  %v1808_v63 = vld [vmem:[%s2551_s2 + $0x18] sm:$0xff] }
  0x1e   : > { %s373_s25 = scalar_lea.vmem %s2564_s0, %s1866_s18  ;;  %s2067_s18 = smov 1   ;;  %vm727_vm6 = vcmp.lt.s32.totalorder %v2214_v28, 127  ;;  %v2072_v6 = vmov 0   ;;  %vm796_vm7 = vcmp.lt.s32.totalorder %v2214_v28, 113  ;;  %vm865_vm8 = vcmp.lt.s32.totalorder %v2214_v28, 112 }
  0x1f   : > { %v378_v0 = vld [vmem:[%s373_s25] sm:$0xff]  ;;  %s2070_s25 = smov 112   ;;  %1940 = vset.pattern.permute.xlu1 %v2072_v6  ;;  %1956 = vset.pattern.permute.xlu0 %v2072_v6  ;;  %vm934_vm9 = vcmp.lt.s32.totalorder %v2214_v28, 111  ;;  %vm1153_vm13 = vcmask 523264   ;;  %vm1209_vm14 = vcmask 64512  }
  0x20   : > { %380 = vst [vmem:[#allocation1] ss:$2 sm:$0xff] %v378_v0  ;;  %v662_v13 = vmul.f32 %v660_v12, %v378_v0 }
  0x27   : > { %v381_v1 = vld.sshfl [vmem:[#allocation1] sm:$0xff pattern:$0x75316420]  ;;  %v382_v2 = vld.sshfl [vmem:[#allocation1 + $0x8] sm:$0xff pattern:$0x75316420] }
  0x28   : > { %385 = vrot.lane.b32.xlu0 %v381_v1, %s2064_s26  ;;  %399 = vst [vmem:[#allocation1] ss:$2 sm:$0xff] %v378_v0 }
  0x2f   : > { %v400_v4 = vld.sshfl [vmem:[#allocation1] sm:$0xff pattern:$0x75316420]  ;;  %v401_v5 = vld.sshfl [vmem:[#allocation1 + $0x8] sm:$0xff pattern:$0x75316420] }
  0x30   : > { %404 = vrot.lane.b32.xlu1 %v400_v4, %s2065_s29  ;;  %387 = vrot.lane.b32.xlu0 %v382_v2, %s2064_s26  ;;  %517 = vst [vmem:[#allocation1] ss:$2 sm:$0xff] %v378_v0  ;;  %s2560_s26 = smov 111   ;;  %v994_v2 = vld [vmem:[%s2552_s3] sm:$0xff]  ;;  %v730_v4 = vperm.slane %v2200_v7, 5 }
  0x37   : > { %v518_v10 = vld.sshfl [vmem:[#allocation1] sm:$0xff pattern:$0x75316420]  ;;  %v519_v11 = vld.sshfl [vmem:[#allocation1 + $0x8] sm:$0xff pattern:$0x75316420] }
  0x38   : > { %406 = vrot.lane.b32.xlu1 %v401_v5, %s2065_s29  ;;  %586 = vst [vmem:[#allocation1] ss:$2 sm:$0xff] %v378_v0  ;;  %522 = vrot.lane.b32.xlu2 %v518_v10, %s2066_s12  ;;  %v731_v5 = vperm.slane %v2194_v3, 5 }
  0x3f   : > { %v588_v14 = vld.sshfl [vmem:[#allocation1 + $0x8] sm:$0xff pattern:$0x75316420]  ;;  %v587_v15 = vld.sshfl [vmem:[#allocation1] sm:$0xff pattern:$0x75316420] }
  0x40   : > { %593 = vrot.lane.b32.xlu1 %v588_v14, %s2067_s18  ;;  %591 = vrot.lane.b32.xlu0 %v587_v15, %s2067_s18  ;;  %666 = vst [vmem:[#allocation1] ss:$2 sm:$0xff] %v662_v13  ;;  %v1818_v13 = vld [vmem:[%s2551_s2 + $0x28] sm:$0xff]  ;;  %v799_v15 = vperm.slane %v2200_v7, 6 }
  0x41   : > { %524 = vrot.lane.b32.xlu2 %v519_v11, %s2066_s12 }
  0x47   : > { %v2204_v16 = vld.sshfl [vmem:[#allocation1] sm:$0xff pattern:$0x75316420]  ;;  %v2206_v17 = vld.sshfl [vmem:[#allocation1 + $0x8] sm:$0xff pattern:$0x75316420] }
  0x48   : > { %718 = vst [vmem:[#allocation1] ss:$2 sm:$0xff] %v378_v0 }
  0x4f   : > { %v720_v18 = vld.sshfl [vmem:[#allocation1 + $0x8] sm:$0xff pattern:$0x75316420]  ;;  %v719_v19 = vld.sshfl [vmem:[#allocation1] sm:$0xff pattern:$0x75316420] }
  0x50   : > { %725 = vrot.lane.b32.xlu0 %v720_v18, %s2068_s20  ;;  %787 = vst [vmem:[#allocation1] ss:$2 sm:$0xff] %v378_v0  ;;  %723 = vrot.lane.b32.xlu2 %v719_v19, %s2068_s20 }
  0x57   : > { %v789_v20 = vld.sshfl [vmem:[#allocation1 + $0x8] sm:$0xff pattern:$0x75316420]  ;;  %v788_v21 = vld.sshfl [vmem:[#allocation1] sm:$0xff pattern:$0x75316420] }
  0x58   : > { %792 = vrot.lane.b32.xlu1 %v788_v21, %s2069_s21  ;;  %856 = vst [vmem:[#allocation1] ss:$2 sm:$0xff] %v378_v0  ;;  %794 = vrot.lane.b32.xlu2 %v789_v20, %s2069_s21 }
  0x5f   : > { %v858_v22 = vld.sshfl [vmem:[#allocation1 + $0x8] sm:$0xff pattern:$0x75316420]  ;;  %v857_v23 = vld.sshfl [vmem:[#allocation1] sm:$0xff pattern:$0x75316420] }
  0x60   : > { %863 = vrot.lane.b32.xlu1 %v858_v22, %s2070_s25  ;;  %861 = vrot.lane.b32.xlu0 %v857_v23, %s2070_s25  ;;  %925 = vst [vmem:[#allocation1] ss:$2 sm:$0xff] %v378_v0  ;;  %v1813_v0 = vld [vmem:[%s2551_s2 + $0x20] sm:$0xff]  ;;  %v1823_v22 = vld [vmem:[%s2551_s2 + $0x30] sm:$0xff]  ;;  %v868_v23 = vperm.slane %v2200_v7, 7 }
  0x61   : > { %v1958_v7 = vld [vmem:[%s2550_s1 + $0x18] ss:$0 sm:$0xff] }
  0x67   : > { %v927_v24 = vld.sshfl [vmem:[#allocation1 + $0x8] sm:$0xff pattern:$0x75316420]  ;;  %v926_v25 = vld.sshfl [vmem:[#allocation1] sm:$0xff pattern:$0x75316420] }
  0x68   : > { %932 = vrot.lane.b32.xlu0 %v927_v24, %s2560_s26  ;;  %930 = vrot.lane.b32.xlu2 %v926_v25, %s2560_s26  ;;  %v869_v24 = vperm.slane %v2194_v3, 7 }
  0x69   : > { %997 = vperm.xlu1 %1940, %v994_v2  }
  0x92   : > { %v523_v29 = vpop.permute.xlu2 %522 }
  0x9a   : > { %v386_v27 = vpop.permute.xlu0 %385 }
  0x9b   : > { %v525_v39 = vpop.permute.xlu2 %524 }
  0x9c   : > { %v527_v44 = vsel %vm526_vm3, %v523_v29, %v525_v39  ;;  %v528_v45 = vsel %vm526_vm3, %v525_v39, %v523_v29  ;;  %v1833_v39 = vld [vmem:[%s2551_s2 + $0x40] sm:$0xff] }
  0x9d   : > { %v531_v52 = vmul.f32 %v529_v42, %v528_v45  ;;  %v532_v53 = vmul.f32 %v530_v43, %v527_v44 }
  0xa2   : > { %v405_v32 = vpop.permute.xlu1 %404  ;;  %v388_v33 = vpop.permute.xlu0 %387 }
  0xa3   : > { %v392_v34 = vsel %vm391_vm1, %v386_v27, %v388_v33  ;;  %v393_v35 = vsel %vm391_vm1, %v388_v33, %v386_v27 }
  0xa4   : > { %v396_v36 = vmul.f32 %v394_v30, %v393_v35  ;;  %v397_v37 = vmul.f32 %v395_v31, %v392_v34 }
  0xa6   : > { %1799 = vmatpush.msk.msra.mxu2 %vm421_vm0, %v396_v36  ;;  %1801 = vmatpush.msk.msra.mxu3 %vm421_vm0, %v397_v37 }
  0xa7   : > { %1800 = vmatmul.msk.f32.vlgmr.msra.gmra.mxu2 %vm417_vm2, %v398_v38  ;;  %1802 = vmatmul.msk.f32.vlgmr.msra.gmra.mxu3 %vm417_vm2, %v398_v38 }
  0xaa   : > { %v407_v46 = vpop.permute.xlu1 %406  ;;  %v724_v1 = vpop.permute.xlu2 %723 }
  0xab   : > { %v409_v47 = vsel %vm408_vm4, %v405_v32, %v407_v46  ;;  %v410_v48 = vsel %vm408_vm4, %v407_v46, %v405_v32  ;;  %v1828_v32 = vld [vmem:[%s2551_s2 + $0x38] sm:$0xff] }
  0xac   : > { %v413_v49 = vmul.f32 %v411_v40, %v410_v48  ;;  %v414_v50 = vmul.f32 %v412_v41, %v409_v47 }
  0xae   : > { %1795 = vmatpush.msk.msra.mxu0 %vm421_vm0, %v413_v49  ;;  %1797 = vmatpush.msk.msra.mxu1 %vm421_vm0, %v414_v50 }
  0xaf   : > { %1796 = vmatmul.msk.f32.vlgmr.msra.gmra.mxu0 %vm417_vm2, %v1794_v51  ;;  %1798 = vmatmul.msk.f32.vlgmr.msra.gmra.mxu1 %vm417_vm2, %v1794_v51 }
  0xb0   : > { %1804 = vmatpush.msk.msrb.mxu0 %vm421_vm0, %v531_v52  ;;  %1806 = vmatpush.msk.msrb.mxu1 %vm421_vm0, %v532_v53 }
  0xb2   : > { %1814 = vmatpush.msk.msra.mxu0 %vm421_vm0, %v2204_v16  ;;  %1816 = vmatpush.msk.msra.mxu1 %vm421_vm0, %v2206_v17  ;;  %v594_v56 = vpop.permute.xlu1 %593  ;;  %v592_v57 = vpop.permute.xlu0 %591  ;;  %v800_v16 = vperm.slane %v2194_v3, 6  ;;  %v1957_v3 = vld [vmem:[%s2550_s1 + $0x10] ss:$0 sm:$0xff] }
  0xb3   : > { %v596_v58 = vsel %vm595_vm5, %v592_v57, %v594_v56  ;;  %v597_v59 = vsel %vm595_vm5, %v594_v56, %v592_v57  ;;  %v795_v14 = vpop.permute.xlu2 %794 }
  0xb4   : > { %v600_v60 = vmul.f32 %v598_v54, %v597_v59  ;;  %v601_v61 = vmul.f32 %v599_v55, %v596_v58 }
  0xb6   : > { %1809 = vmatpush.msk.msrb.mxu2 %vm421_vm0, %v600_v60  ;;  %1811 = vmatpush.msk.msrb.mxu3 %vm421_vm0, %v601_v61 }
  0xb7   : > { %1805 = vmatmul.msk.f32.vlgmr.msrb.gmra.mxu0 %vm417_vm2, %v1803_v62  ;;  %1807 = vmatmul.msk.f32.vlgmr.msrb.gmra.mxu1 %vm417_vm2, %v1803_v62 }
  0xb8   : > { %1810 = vmatmul.msk.f32.vlgmr.msrb.gmra.mxu2 %vm417_vm2, %v1808_v63  ;;  %1812 = vmatmul.msk.f32.vlgmr.msrb.gmra.mxu3 %vm417_vm2, %v1808_v63 }
  0xbf   : > { %1815 = vmatmul.msk.f32.vlgmr.msra.gmra.mxu0 %vm417_vm2, %v1813_v0  ;;  %1817 = vmatmul.msk.f32.vlgmr.msra.gmra.mxu1 %vm417_vm2, %v1813_v0 }
  0xc2   : > { %v726_v8 = vpop.permute.xlu0 %725  ;;  %v931_v33 = vpop.permute.xlu2 %930 }
  0xc3   : > { %v728_v9 = vsel %vm727_vm6, %v724_v1, %v726_v8  ;;  %v729_v10 = vsel %vm727_vm6, %v726_v8, %v724_v1 }
  0xc4   : > { %v732_v11 = vmul.f32 %v730_v4, %v728_v9  ;;  %v733_v12 = vmul.f32 %v731_v5, %v729_v10 }
  0xc6   : > { %1819 = vmatpush.msk.msra.mxu2 %vm421_vm0, %v732_v11  ;;  %1821 = vmatpush.msk.msra.mxu3 %vm421_vm0, %v733_v12 }
  0xc7   : > { %1820 = vmatmul.msk.f32.vlgmr.msra.gmra.mxu2 %vm417_vm2, %v1818_v13  ;;  %1822 = vmatmul.msk.f32.vlgmr.msra.gmra.mxu3 %vm417_vm2, %v1818_v13 }
  0xca   : > { %v793_v17 = vpop.permute.xlu1 %792 }
  0xcb   : > { %v797_v18 = vsel %vm796_vm7, %v793_v17, %v795_v14  ;;  %v798_v19 = vsel %vm796_vm7, %v795_v14, %v793_v17 }
  0xcc   : > { %v801_v20 = vmul.f32 %v799_v15, %v797_v18  ;;  %v802_v21 = vmul.f32 %v800_v16, %v798_v19 }
  0xce   : > { %1824 = vmatpush.msk.msrb.mxu0 %vm421_vm0, %v801_v20  ;;  %1826 = vmatpush.msk.msrb.mxu1 %vm421_vm0, %v802_v21 }
  0xcf   : > { %1825 = vmatmul.msk.f32.vlgmr.msrb.gmra.mxu0 %vm417_vm2, %v1823_v22  ;;  %1827 = vmatmul.msk.f32.vlgmr.msrb.gmra.mxu1 %vm417_vm2, %v1823_v22 }
  0xd2   : > { %v864_v25 = vpop.permute.xlu1 %863  ;;  %v862_v26 = vpop.permute.xlu0 %861 }
  0xd3   : > { %v866_v27 = vsel %vm865_vm8, %v862_v26, %v864_v25  ;;  %v867_v29 = vsel %vm865_vm8, %v864_v25, %v862_v26 }
  0xd4   : > { %v870_v30 = vmul.f32 %v868_v23, %v866_v27  ;;  %v871_v31 = vmul.f32 %v869_v24, %v867_v29 }
  0xd6   : > { %1829 = vmatpush.msk.msrb.mxu2 %vm421_vm0, %v870_v30  ;;  %1831 = vmatpush.msk.msrb.mxu3 %vm421_vm0, %v871_v31 }
  0xd7   : > { %1830 = vmatmul.msk.f32.vlgmr.msrb.gmra.mxu2 %vm417_vm2, %v1828_v32  ;;  %1832 = vmatmul.msk.f32.vlgmr.msrb.gmra.mxu3 %vm417_vm2, %v1828_v32 }
  0xda   : > { %v933_v34 = vpop.permute.xlu0 %932 }
  0xdb   : > { %v935_v35 = vsel %vm934_vm9, %v931_v33, %v933_v34  ;;  %v936_v36 = vsel %vm934_vm9, %v933_v34, %v931_v33  ;;  %v998_v8 = vpop.permute.xlu1 %997 }
  0xdc   : > { %v939_v37 = vmul.f32 %v1957_v3, %v935_v35  ;;  %v940_v38 = vmul.f32 %v1958_v7, %v936_v36 }
  0xde   : > { %1834 = vmatpush.msk.msra.mxu0 %vm421_vm0, %v939_v37  ;;  %1836 = vmatpush.msk.msra.mxu1 %vm421_vm0, %v940_v38 }
  0xdf   : > { %1835 = vmatmul.msk.f32.vlgmr.msra.gmra.mxu0 %vm417_vm2, %v1833_v39  ;;  %1837 = vmatmul.msk.f32.vlgmr.msra.gmra.mxu1 %vm417_vm2, %v1833_v39 }
 0x12a   : > { %v494_v42 = vpop.f32.mrf.mxu2  ;;  %v514_v43 = vpop.f32.mrf.mxu3 }
 0x12c   : > { %v445_v40 = vpop.f32.mrf.mxu0  ;;  %v465_v41 = vpop.f32.mrf.mxu1 }
 0x12d   : > { %v495_v46 = vadd.f32 %v494_v42, %v445_v40  ;;  %v515_v47 = vadd.f32 %v514_v43, %v465_v41  ;;  %v1088_v43 = vld [vmem:[%s2553_s4 + $0x78] sm:$0xff] }
 0x12e   : > { %1105 = vmatpush.msra.mxu2 %v1088_v43 }
 0x134   : > { %v561_v44 = vpop.f32.mrf.mxu0  ;;  %v581_v45 = vpop.f32.mrf.mxu1 }
 0x135   : > { %v584_v50 = vadd.f32 %v561_v44, %v495_v46  ;;  %v585_v51 = vadd.f32 %v581_v45, %v515_v47  ;;  %v1104_v44 = vld [vmem:[%s2553_s4 + $0xf8] sm:$0xff]  ;;  %v1087_v45 = vld [vmem:[%s2553_s4 + $0x70] sm:$0xff] }
 0x136   : > { %1125 = vmatpush.msra.mxu3 %v1104_v44  ;;  %v1103_v47 = vld [vmem:[%s2553_s4 + $0xf0] sm:$0xff]  ;;  %1106 = vmatpush.msra.mxu2 %v1087_v45 }
 0x138   : > { %1126 = vmatpush.msra.mxu3 %v1103_v47 }
 0x13b   : > { %v630_v48 = vpop.f32.mrf.mxu2  ;;  %v650_v49 = vpop.f32.mrf.mxu3 }
 0x13c   : > { %v693_v52 = vpop.f32.mrf.mxu0  ;;  %v713_v53 = vpop.f32.mrf.mxu1  ;;  %v653_v54 = vadd.f32 %v630_v48, %v584_v50  ;;  %v654_v55 = vadd.f32 %v650_v49, %v585_v51  ;;  %v1086_v50 = vld [vmem:[%s2553_s4 + $0x68] sm:$0xff] }
 0x13d   : > { %v1102_v51 = vld [vmem:[%s2553_s4 + $0xe8] sm:$0xff]  ;;  %1107 = vmatpush.msra.mxu2 %v1086_v50 }
 0x13e   : > { %v716_v58 = vadd.f32 %v693_v52, %v653_v54  ;;  %v717_v59 = vadd.f32 %v713_v53, %v654_v55  ;;  %v1085_v54 = vld [vmem:[%s2553_s4 + $0x60] sm:$0xff]  ;;  %1127 = vmatpush.msra.mxu3 %v1102_v51 }
 0x13f   : > { %v1101_v55 = vld [vmem:[%s2553_s4 + $0xe0] sm:$0xff]  ;;  %1108 = vmatpush.msra.mxu2 %v1085_v54 }
 0x140   : > { %1128 = vmatpush.msra.mxu3 %v1101_v55 }
 0x14a   : > { %v762_v56 = vpop.f32.mrf.mxu2  ;;  %v782_v57 = vpop.f32.mrf.mxu3 }
 0x14b   : > { %v785_v62 = vadd.f32 %v762_v56, %v716_v58  ;;  %v786_v63 = vadd.f32 %v782_v57, %v717_v59  ;;  %v1084_v57 = vld [vmem:[%s2553_s4 + $0x58] sm:$0xff]  ;;  %v1641_v59 = vld [vmem:[%s2556_s7] sm:$0xff] }
 0x14c   : > { %v831_v60 = vpop.f32.mrf.mxu0  ;;  %v851_v61 = vpop.f32.mrf.mxu1  ;;  %v1100_v58 = vld [vmem:[%s2553_s4 + $0xd8] sm:$0xff]  ;;  %1109 = vmatpush.msra.mxu2 %v1084_v57 }
 0x14d   : > { %v854_v0 = vadd.f32 %v831_v60, %v785_v62  ;;  %v855_v1 = vadd.f32 %v851_v61, %v786_v63  ;;  %1129 = vmatpush.msra.mxu3 %v1100_v58  ;;  %v1083_v60 = vld [vmem:[%s2553_s4 + $0x50] sm:$0xff]  ;;  %v1082_v62 = vld [vmem:[%s2553_s4 + $0x48] sm:$0xff] }
 0x14e   : > { %v1099_v61 = vld [vmem:[%s2553_s4 + $0xd0] sm:$0xff]  ;;  %1110 = vmatpush.msra.mxu2 %v1083_v60  ;;  %v1098_v63 = vld [vmem:[%s2553_s4 + $0xc8] sm:$0xff] }
 0x14f   : > { %1130 = vmatpush.msra.mxu3 %v1099_v61 }
 0x150   : > { %1111 = vmatpush.msra.mxu2 %v1082_v62  ;;  %v1313_v62 = vld [vmem:[#allocation2 + $0xc8] sm:$0xff] }
 0x151   : > { %1131 = vmatpush.msra.mxu3 %v1098_v63  ;;  %v1312_v63 = vld [vmem:[#allocation2 + $0xc0] sm:$0xff] }
 0x15a   : > { %v900_v2 = vpop.f32.mrf.mxu2  ;;  %v920_v4 = vpop.f32.mrf.mxu3 }
 0x15b   : > { %v923_v5 = vadd.f32 %v900_v2, %v854_v0  ;;  %v924_v6 = vadd.f32 %v920_v4, %v855_v1  ;;  %v1081_v0 = vld [vmem:[%s2553_s4 + $0x40] sm:$0xff]  ;;  %v1080_v2 = vld [vmem:[%s2553_s4 + $0x38] sm:$0xff] }
 0x15c   : > { %v969_v9 = vpop.f32.mrf.mxu0  ;;  %v989_v10 = vpop.f32.mrf.mxu1  ;;  %v1097_v1 = vld [vmem:[%s2553_s4 + $0xc0] sm:$0xff]  ;;  %1112 = vmatpush.msra.mxu2 %v1081_v0  ;;  %v1096_v4 = vld [vmem:[%s2553_s4 + $0xb8] sm:$0xff] }
 0x15d   : > { %v992_v11 = vadd.f32 %v969_v9, %v923_v5  ;;  %v993_v12 = vadd.f32 %v989_v10, %v924_v6  ;;  %1132 = vmatpush.msra.mxu3 %v1097_v1  ;;  %v1079_v5 = vld [vmem:[%s2553_s4 + $0x30] sm:$0xff]  ;;  %v1094_v9 = vld [vmem:[%s2553_s4 + $0xa8] sm:$0xff]  ;;  %v1077_v10 = vld [vmem:[%s2553_s4 + $0x20] sm:$0xff] }
 0x15e   : > { %1113 = vmatpush.msra.mxu2 %v1080_v2  ;;  %v1095_v6 = vld [vmem:[%s2553_s4 + $0xb0] sm:$0xff]  ;;  %v1264_v2 = vld [vmem:[#allocation2 + $0xb8] sm:$0xff] }
 0x15f   : > { %v1000_v13 = vadd.f32 %v998_v8, %v992_v11  ;;  %v1001_v14 = vadd.f32 %v998_v8, %v993_v12  ;;  %1133 = vmatpush.msra.mxu3 %v1096_v4  ;;  %v1078_v8 = vld [vmem:[%s2553_s4 + $0x28] sm:$0xff]  ;;  %v1093_v11 = vld [vmem:[%s2553_s4 + $0xa0] sm:$0xff]  ;;  %v1076_v12 = vld [vmem:[%s2553_s4 + $0x18] sm:$0xff] }
 0x160   : > { %1114 = vmatpush.msra.mxu2 %v1079_v5  ;;  %v1177_v4 = vld [vmem:[%s2555_s6] sm:$0xff] }
 0x161   : > { %v1002_v15 = vadd.f32 %v1001_v14, %v1000_v13  ;;  %v1013_v16 = vmul.f32 %v1000_v13, %v1000_v13  ;;  %v1014_v17 = vmul.f32 %v1001_v14, %v1001_v14  ;;  %1134 = vmatpush.msra.mxu3 %v1095_v6 }
 0x162   : > { %1115 = vmatpush.msra.mxu2 %v1078_v8  ;;  %v1840_v8 = vld [vmem:[%s2555_s6 + $0x8] sm:$0xff] }
 0x163   : > { %1003 = vadd.xlane.f32.xlu2 %v1002_v15  ;;  %v1015_v18 = vadd.f32 %v1014_v17, %v1013_v16  ;;  %1135 = vmatpush.msra.mxu3 %v1094_v9  ;;  %v1091_v15 = vld [vmem:[%s2553_s4 + $0x90] sm:$0xff]  ;;  %v1074_v16 = vld [vmem:[%s2553_s4 + $0x8] sm:$0xff]  ;;  %v1263_v9 = vld [vmem:[#allocation2 + $0xb0] sm:$0xff] }
 0x164   : > { %1116 = vmatpush.msra.mxu2 %v1077_v10  ;;  %v1090_v17 = vld [vmem:[%s2553_s4 + $0x88] sm:$0xff]  ;;  %v1262_v10 = vld [vmem:[#allocation2 + $0xa8] sm:$0xff] }
 0x165   : > { %1016 = vadd.xlane.f32.xlu0 %v1015_v18  ;;  %1136 = vmatpush.msra.mxu3 %v1093_v11  ;;  %v1073_v18 = vld [vmem:[%s2553_s4] sm:$0xff]  ;;  %v1261_v11 = vld [vmem:[#allocation2 + $0xa0] sm:$0xff] }
 0x166   : > { %1117 = vmatpush.msra.mxu2 %v1076_v12 }
 0x1d6   : > { %v1004_v19 = vpop.xlane.xlu2 %1003 }
 0x1d7   : > { %v1005_v20 = vrot.slane %v1004_v19, 4 }
 0x1d8   : > { %v1017_v21 = vpop.xlane.xlu0 %1016 }
 0x1d9   : > { %v1006_v22 = vadd.f32 %v1005_v20, %v1004_v19  ;;  %v1018_v23 = vrot.slane %v1017_v21, 4  ;;  %v1089_v19 = vld [vmem:[%s2553_s4 + $0x80] sm:$0xff] }
 0x1da   : > { %v1152_v20 = vld [vmem:[#allocation2 + $0x38] sm:$0xff] }
 0x1db   : > { %v1007_v24 = vrot.slane %v1006_v22, 2  ;;  %v1019_v25 = vadd.f32 %v1018_v23, %v1017_v21  ;;  %v1186_v21 = vld [vmem:[#allocation2 + $0x78] sm:$0xff]  ;;  %1165 = vmatpush.msrb.mxu0 %v1152_v20  ;;  %v1151_v23 = vld [vmem:[#allocation2 + $0x30] sm:$0xff]  ;;  %v1426_v20 = vld [vmem:[#allocation2 + $0x160] sm:$0xff] }
 0x1dc   : > { %1195 = vmatpush.msrb.mxu1 %v1186_v21  ;;  %v1425_v21 = vld [vmem:[#allocation2 + $0x158] sm:$0xff] }
 0x1dd   : > { %v1020_v26 = vrot.slane %v1019_v25, 2  ;;  %v1008_v27 = vadd.f32 %v1007_v24, %v1006_v22  ;;  %v1319_v22 = vld [vmem:[#allocation2 + $0xf8] sm:$0xff]  ;;  %v1185_v24 = vld [vmem:[#allocation2 + $0x70] sm:$0xff]  ;;  %1166 = vmatpush.msrb.mxu0 %v1151_v23  ;;  %v1423_v23 = vld [vmem:[#allocation2 + $0x148] sm:$0xff] }
 0x1de   : > { %1196 = vmatpush.msrb.mxu1 %v1185_v24  ;;  %v1422_v24 = vld [vmem:[#allocation2 + $0x140] sm:$0xff] }
 0x1df   : > { %v1021_v29 = vadd.f32 %v1020_v26, %v1019_v25  ;;  %v1009_v30 = vrot.slane %v1008_v27, 1  ;;  %v1318_v25 = vld [vmem:[#allocation2 + $0xf0] sm:$0xff]  ;;  %v1150_v26 = vld [vmem:[#allocation2 + $0x28] sm:$0xff] }
 0x1e0   : > { %1167 = vmatpush.msrb.mxu0 %v1150_v26 }
 0x1e1   : > { %v1010_v31 = vadd.f32 %v1009_v30, %v1008_v27  ;;  %v1022_v32 = vrot.slane %v1021_v29, 1  ;;  %v1184_v27 = vld [vmem:[#allocation2 + $0x68] sm:$0xff]  ;;  %v1149_v30 = vld [vmem:[#allocation2 + $0x20] sm:$0xff] }
 0x1e2   : > { %1197 = vmatpush.msrb.mxu1 %v1184_v27  ;;  %1168 = vmatpush.msrb.mxu0 %v1149_v30  ;;  %v1844_v27 = vld [vmem:[%s2555_s6 + $0x10] sm:$0xff]  ;;  %v1374_v30 = vld [vmem:[#allocation2 + $0x138] sm:$0xff] }
 0x1e3   : > { %1867 = vpush %v1010_v31  ;;  %v1023_v3 = vadd.f32 %v1022_v32, %v1021_v29  ;;  %v1317_v29 = vld [vmem:[#allocation2 + $0xe8] sm:$0xff]  ;;  %v1183_v31 = vld [vmem:[#allocation2 + $0x60] sm:$0xff] }
 0x1e4   : > { %v1316_v32 = vld [vmem:[#allocation2 + $0xe0] sm:$0xff]  ;;  %1198 = vmatpush.msrb.mxu1 %v1183_v31  ;;  %v1373_v31 = vld [vmem:[#allocation2 + $0x130] sm:$0xff] }
 0x1e5   : > { %1869 = vpush %v1023_v3  ;;  %v1148_v3 = vld [vmem:[#allocation2 + $0x18] sm:$0xff] }
 0x1e6   : > { %1169 = vmatpush.msrb.mxu0 %v1148_v3  ;;  %v1371_v3 = vld [vmem:[#allocation2 + $0x120] sm:$0xff] }
 0x214   : > { %s1868_s27 = spop %1867 }
 0x215   : > { %s1012_s28 = smul.f32 0.00048828125, %s1868_s27 }
 0x216   : > { %s1870_s29 = spop %1869 }
 0x217   : > { %s1026_s30 = smul.f32 %s1012_s28, %s1012_s28  ;;  %v1028_v40 = vstv %s1012_s28 }
 0x218   : > { %s1025_s11 = smul.f32 0.00048828125, %s1870_s29  ;;  %v1029_v41 = vsub.f32 %v1000_v13, %v1028_v40  ;;  %v1030_v42 = vsub.f32 %v1001_v14, %v1028_v40  ;;  %v1092_v13 = vld [vmem:[%s2553_s4 + $0x98] sm:$0xff]  ;;  %v1075_v14 = vld [vmem:[%s2553_s4 + $0x10] sm:$0xff] }
 0x219   : > { %1137 = vmatpush.msra.mxu3 %v1092_v13  ;;  %1118 = vmatpush.msra.mxu2 %v1075_v14  ;;  %v1260_v13 = vld [vmem:[#allocation2 + $0x98] sm:$0xff]  ;;  %v1259_v14 = vld [vmem:[#allocation2 + $0x90] sm:$0xff] }
 0x21a   : > { %s1027_s12 = ssub.f32 %s1025_s11, %s1026_s30  ;;  %s2565_s11 = smov 111  }
 0x21b   : > { %1138 = vmatpush.msra.mxu3 %v1091_v15  ;;  %1119 = vmatpush.msra.mxu2 %v1074_v16  ;;  %v1258_v15 = vld [vmem:[#allocation2 + $0x88] sm:$0xff]  ;;  %v1257_v16 = vld [vmem:[#allocation2 + $0x80] sm:$0xff] }
 0x21c   : > { %s1031_s18 = sadd.f32 1e-05, %s1027_s12 }
 0x21d   : > { %1139 = vmatpush.msra.mxu3 %v1090_v17  ;;  %1120 = vmatpush.msra.mxu2 %v1073_v18  ;;  %v1429_v17 = vld [vmem:[#allocation2 + $0x178] sm:$0xff]  ;;  %v1428_v18 = vld [vmem:[#allocation2 + $0x170] sm:$0xff] }
 0x21e   : > { %v1032_v7 = vstv %s1031_s18 }
 0x21f   : > { %1959 = vrsqrt.f32 %v1032_v7  ;;  %vm1039_vm11 = vweird.f32 %v1032_v7  ;;  %1140 = vmatpush.msra.mxu3 %v1089_v19  ;;  %1328 = vmatpush.msrb.mxu2 %v1319_v22  ;;  %v1427_v19 = vld [vmem:[#allocation2 + $0x168] sm:$0xff]  ;;  %v1424_v22 = vld [vmem:[#allocation2 + $0x150] sm:$0xff] }
 0x221   : > { %1329 = vmatpush.msrb.mxu2 %v1318_v25  ;;  %v1847_v25 = vld [vmem:[%s2555_s6 + $0x18] sm:$0xff] }
 0x223   : > { %1330 = vmatpush.msrb.mxu2 %v1317_v29 }
 0x225   : > { %v1960_v33 = vpop.eup %1959  ;;  %1331 = vmatpush.msrb.mxu2 %v1316_v32  ;;  %v1372_v32 = vld [vmem:[#allocation2 + $0x128] sm:$0xff] }
 0x226   : > { %v1034_v34 = vmul.f32 %v1960_v33, %v1032_v7  ;;  %vm1040_vm10 = vweird.f32 %v1960_v33  ;;  %v1182_v7 = vld [vmem:[#allocation2 + $0x58] sm:$0xff] }
 0x227   : > { %vm1041_vm12 = vmor %vm1039_vm11, %vm1040_vm10  ;;  %1199 = vmatpush.msrb.mxu1 %v1182_v7  ;;  %v1370_v7 = vld [vmem:[#allocation2 + $0x118] sm:$0xff] }
 0x228   : > { %v1035_v35 = vmul.f32 %v1960_v33, %v1034_v34 }
 0x22a   : > { %v1036_v36 = vmul.f32 0.5, %v1035_v35  ;;  %v1147_v35 = vld [vmem:[#allocation2 + $0x10] sm:$0xff] }
 0x22b   : > { %1170 = vmatpush.msrb.mxu0 %v1147_v35  ;;  %v1367_v35 = vld [vmem:[#allocation2 + $0x100] sm:$0xff] }
 0x22c   : > { %v1037_v37 = vsub.f32 1.5, %v1036_v36  ;;  %v1181_v36 = vld [vmem:[#allocation2 + $0x50] sm:$0xff] }
 0x22d   : > { %1200 = vmatpush.msrb.mxu1 %v1181_v36  ;;  %v1539_v36 = vld [vmem:[#allocation2 + $0x1f8] sm:$0xff] }
 0x22e   : > { %v1038_v38 = vmul.f32 %v1960_v33, %v1037_v37  ;;  %v1314_v37 = vld [vmem:[#allocation2 + $0xd0] sm:$0xff] }
 0x230   : > { %v1042_v39 = vsel %vm1041_vm12, %v1960_v33, %v1038_v38  ;;  %v1315_v33 = vld [vmem:[#allocation2 + $0xd8] sm:$0xff] }
 0x231   : > { %1871 = vpush %v1042_v39  ;;  %1332 = vmatpush.msrb.mxu2 %v1315_v33  ;;  %v1369_v33 = vld [vmem:[#allocation2 + $0x110] sm:$0xff] }
 0x233   : > { %1333 = vmatpush.msrb.mxu2 %v1314_v37 }
 0x235   : > { %1334 = vmatpush.msrb.mxu2 %v1313_v62  ;;  %v1477_v62 = vld [vmem:[#allocation2 + $0x180] sm:$0xff] }
 0x237   : > { %1335 = vmatpush.msrb.mxu2 %v1312_v63 }
 0x262   : > { %s1872_s21 = spop %1871 }
 0x263   : > { %v1044_v46 = vstv %s1872_s21 }
 0x264   : > { %v2336_v48 = vmul.f32 %v1044_v46, %v1029_v41  ;;  %v2338_v49 = vmul.f32 %v1044_v46, %v1030_v42 }
 0x266   : > { %v1047_v52 = vmax.f32 %v2336_v48, 0.0  ;;  %v1048_v53 = vmax.f32 %v2338_v49, 0.0  ;;  %v1146_v48 = vld [vmem:[#allocation2 + $0x8] sm:$0xff]  ;;  %v1145_v49 = vld [vmem:[#allocation2] sm:$0xff] }
 0x267   : > { %1171 = vmatpush.msrb.mxu0 %v1146_v48 }
 0x268   : > { %v1941_v56 = vpack.i.bf16 %v1048_v53, %v1047_v52 }
 0x269   : > { %1172 = vmatpush.msrb.mxu0 %v1145_v49 }
 0x26a   : > { %1942 = vrot.lane.b32.xlu1 %v1941_v56, %s2068_s20 }
 0x272   : > { %1947 = vrot.lane.b32.xlu1 %v1941_v56, %s2070_s25  ;;  %s367_s25 = sand.u32 1, %s2051_s14  }
 0x273   : > { %s1707_s20 = scalar_lea.sflag [#allocation4], %s367_s25 }
 0x27a   : > { %1952 = vrot.lane.b32.xlu1 %v1941_v56, %s2565_s11 }
 0x282   : > { %1644 = vperm.xlu1 %1940, %v1641_v59  }
 0x2dc   : > { %v1943_v34 = vpop.permute.xlu1 %1942 }
 0x2dd   : > { %v1945_v39 = vunpack.i.h.bf16 %v1943_v34  ;;  %v1944_v40 = vunpack.i.l.bf16 %v1943_v34  ;;  %v1368_v34 = vld [vmem:[#allocation2 + $0x108] sm:$0xff] }
 0x2df   : > { %v1053_v43 = vsel %vm727_vm6, %v1944_v40, %v1945_v39  ;;  %v1054_v44 = vsel %vm727_vm6, %v1945_v39, %v1944_v40  ;;  %v1538_v39 = vld [vmem:[#allocation2 + $0x1f0] sm:$0xff]  ;;  %v1537_v40 = vld [vmem:[#allocation2 + $0x1e8] sm:$0xff] }
 0x2e0   : > { %v1055_v47 = vmax.f32 %v1047_v52, %v1053_v43  ;;  %v1056_v50 = vmax.f32 %v1048_v53, %v1054_v44  ;;  %v1180_v52 = vld [vmem:[#allocation2 + $0x48] sm:$0xff]  ;;  %v1179_v53 = vld [vmem:[#allocation2 + $0x40] sm:$0xff]  ;;  %v1534_v43 = vld [vmem:[#allocation2 + $0x1d0] sm:$0xff] }
 0x2e1   : > { %1201 = vmatpush.msrb.mxu1 %v1180_v52  ;;  %v1533_v44 = vld [vmem:[#allocation2 + $0x1c8] sm:$0xff] }
 0x2e2   : > { %v1478_v52 = vld [vmem:[#allocation2 + $0x188] sm:$0xff] }
 0x2e3   : > { %1202 = vmatpush.msrb.mxu1 %v1179_v53  ;;  %v1859_v53 = vld [vmem:[%s2555_s6 + $0x38] sm:$0xff] }
 0x2e4   : > { %v1948_v38 = vpop.permute.xlu1 %1947 }
 0x2e5   : > { %v1950_v41 = vunpack.i.h.bf16 %v1948_v38  ;;  %v1949_v42 = vunpack.i.l.bf16 %v1948_v38  ;;  %v1853_v38 = vld [vmem:[%s2555_s6 + $0x28] sm:$0xff] }
 0x2e7   : > { %v1061_v45 = vsel %vm865_vm8, %v1949_v42, %v1950_v41  ;;  %v1062_v46 = vsel %vm865_vm8, %v1950_v41, %v1949_v42  ;;  %v1536_v41 = vld [vmem:[#allocation2 + $0x1e0] sm:$0xff]  ;;  %v1535_v42 = vld [vmem:[#allocation2 + $0x1d8] sm:$0xff] }
 0x2e8   : > { %v1063_v56 = vmax.f32 %v1055_v47, %v1061_v45  ;;  %v1064_v57 = vmax.f32 %v1056_v50, %v1062_v46  ;;  %v1532_v45 = vld [vmem:[#allocation2 + $0x1c0] sm:$0xff] }
 0x2ec   : > { %v1953_v51 = vpop.permute.xlu1 %1952 }
 0x2ed   : > { %v1955_v54 = vunpack.i.h.bf16 %v1953_v51  ;;  %v1954_v55 = vunpack.i.l.bf16 %v1953_v51 }
 0x2ef   : > { %v1069_v58 = vsel %vm934_vm9, %v1954_v55, %v1955_v54  ;;  %v1070_v59 = vsel %vm934_vm9, %v1955_v54, %v1954_v55  ;;  %v1850_v54 = vld [vmem:[%s2555_s6 + $0x20] sm:$0xff] }
 0x2f0   : > { %v1071_v60 = vmax.f32 %v1063_v56, %v1069_v58  ;;  %v1072_v61 = vmax.f32 %v1064_v57, %v1070_v59  ;;  %v1484_v56 = vld [vmem:[#allocation2 + $0x1b8] sm:$0xff]  ;;  %v1483_v57 = vld [vmem:[#allocation2 + $0x1b0] sm:$0xff]  ;;  %v1482_v58 = vld [vmem:[#allocation2 + $0x1a8] sm:$0xff] }
 0x2f1   : > { %v1481_v59 = vld [vmem:[#allocation2 + $0x1a0] sm:$0xff] }
 0x2f2   : > { %1121 = vmatmul.f32.vlgmr.msra.gmra.mxu2 %v1071_v60  ;;  %1141 = vmatmul.f32.vlgmr.msra.gmra.mxu3 %v1072_v61  ;;  %v1480_v60 = vld [vmem:[#allocation2 + $0x198] sm:$0xff]  ;;  %v1479_v61 = vld [vmem:[#allocation2 + $0x190] sm:$0xff] }
 0x375   : > { %v1122_v0 = vpop.f32.mrf.mxu2  ;;  %v1142_v1 = vpop.f32.mrf.mxu3 }
 0x376   : > { %v2452_v28 = vadd.f32 %v1142_v1, %v1122_v0 }
 0x378   : > { %1838 = vmatmul.msk.f32.vlgmr.msrb.gmra.mxu0 %vm1153_vm13, %v2452_v28  ;;  %1839 = vmatmul.msk.f32.vlgmr.msrb.gmra.mxu1 %vm1153_vm13, %v2452_v28 }
 0x379   : > { %1846 = vmatmul.msk.f32.vlgmr.msrb.gmra.mxu2 %vm1153_vm13, %v2452_v28 }
 0x3f5   : > { %v1174_v5 = vpop.f32.mrf.mxu0  ;;  %v1204_v6 = vpop.f32.mrf.mxu1 }
 0x3f6   : > { %1228 = vmatpush.msra.mxu0 %v1204_v6  ;;  %1251 = vmatpush.msra.mxu1 %v1174_v5  ;;  %v1594_v6 = vld [vmem:[#allocation2 + $0x238] sm:$0xff] }
 0x3f7   : > { %1842 = vmatmul.msk.f32.vlgmr.msra.gmra.mxu1 %vm1209_vm14, %v1177_v4  ;;  %1841 = vmatmul.msk.f32.vlgmr.msra.gmra.mxu0 %vm1209_vm14, %v1840_v8  ;;  %v1856_v4 = vld [vmem:[%s2555_s6 + $0x30] sm:$0xff]  ;;  %v1593_v8 = vld [vmem:[#allocation2 + $0x230] sm:$0xff] }
 0x3f8   : > { %1273 = vmatpush.msrb.mxu0 %v1264_v2 }
 0x3fa   : > { %1274 = vmatpush.msrb.mxu0 %v1263_v9  ;;  %v1592_v9 = vld [vmem:[#allocation2 + $0x228] sm:$0xff] }
 0x3fc   : > { %1275 = vmatpush.msrb.mxu0 %v1262_v10  ;;  %v1337_v12 = vpop.f32.mrf.mxu2  ;;  %v1591_v10 = vld [vmem:[#allocation2 + $0x220] sm:$0xff] }
 0x3fd   : > { %1360 = vmatpush.msrb.mxu3 %v1337_v12  ;;  %v1589_v12 = vld [vmem:[#allocation2 + $0x210] sm:$0xff] }
 0x3fe   : > { %1276 = vmatpush.msrb.mxu0 %v1261_v11  ;;  %1848 = vmatmul.msk.f32.vlgmr.msrb.gmra.mxu3 %vm1209_vm14, %v1847_v25  ;;  %v1590_v11 = vld [vmem:[#allocation2 + $0x218] sm:$0xff] }
 0x400   : > { %1277 = vmatpush.msrb.mxu0 %v1260_v13  ;;  %v1588_v13 = vld [vmem:[#allocation2 + $0x208] sm:$0xff] }
 0x402   : > { %1278 = vmatpush.msrb.mxu0 %v1259_v14  ;;  %v1587_v14 = vld [vmem:[#allocation2 + $0x200] sm:$0xff] }
 0x404   : > { %1279 = vmatpush.msrb.mxu0 %v1258_v15 }
 0x406   : > { %1280 = vmatpush.msrb.mxu0 %v1257_v16 }
 0x407   : > { %1843 = vmatmul.msk.f32.vlgmr.msrb.gmra.mxu0 %vm1153_vm13, %v2452_v28 }
 0x408   : > { %1438 = vmatpush.msra.mxu0 %v1429_v17 }
 0x40a   : > { %1439 = vmatpush.msra.mxu0 %v1428_v18  ;;  %v1862_v18 = vld [vmem:[%s2555_s6 + $0x40] sm:$0xff] }
 0x40c   : > { %1440 = vmatpush.msra.mxu0 %v1427_v19 }
 0x40e   : > { %1441 = vmatpush.msra.mxu0 %v1426_v20 }
 0x410   : > { %1442 = vmatpush.msra.mxu0 %v1425_v21 }
 0x412   : > { %1443 = vmatpush.msra.mxu0 %v1424_v22 }
 0x414   : > { %1444 = vmatpush.msra.mxu0 %v1423_v23 }
 0x416   : > { %1445 = vmatpush.msra.mxu0 %v1422_v24  ;;  %v1645_v24 = vpop.permute.xlu1 %1644 }
 0x417   : > { %1852 = vmatmul.msk.f32.vlgmr.msra.gmra.mxu0 %vm1153_vm13, %v2452_v28 }
 0x474   : > { %v1230_v26 = vpop.f32.mrf.mxu0  ;;  %v1253_v46 = vpop.f32.mrf.mxu1 }
 0x475   : > { %v1254_v47 = vadd.f32 %v1253_v46, %v1230_v26 }
 0x481   : > { %v1362_v63 = vpop.f32.mrf.mxu3 }
 0x484   : > { %v1282_v29 = vpop.f32.mrf.mxu0 }
 0x485   : > { %1305 = vmatpush.msrb.mxu1 %v1282_v29 }
 0x486   : > { %1845 = vmatmul.msk.f32.vlgmr.msrb.gmra.mxu1 %vm1209_vm14, %v1844_v27 }
 0x487   : > { %1383 = vmatpush.msra.mxu1 %v1374_v30 }
 0x489   : > { %1384 = vmatpush.msra.mxu1 %v1373_v31 }
 0x48b   : > { %1385 = vmatpush.msra.mxu1 %v1372_v32 }
 0x48d   : > { %1386 = vmatpush.msra.mxu1 %v1371_v3 }
 0x48f   : > { %1387 = vmatpush.msra.mxu1 %v1370_v7 }
 0x491   : > { %1388 = vmatpush.msra.mxu1 %v1369_v33 }
 0x493   : > { %1389 = vmatpush.msra.mxu1 %v1368_v34 }
 0x494   : > { %v1447_v37 = vpop.f32.mrf.mxu0 }
 0x495   : > { %1390 = vmatpush.msra.mxu1 %v1367_v35  ;;  %1470 = vmatpush.msra.mxu2 %v1447_v37 }
 0x496   : > { %1849 = vmatmul.msk.f32.vlgmr.msra.gmra.mxu1 %vm1153_vm13, %v2452_v28  ;;  %1854 = vmatmul.msk.f32.vlgmr.msra.gmra.mxu2 %vm1209_vm14, %v1853_v38 }
 0x497   : > { %1548 = vmatpush.msrb.mxu2 %v1539_v36 }
 0x499   : > { %1549 = vmatpush.msrb.mxu2 %v1538_v39 }
 0x49b   : > { %1550 = vmatpush.msrb.mxu2 %v1537_v40 }
 0x49d   : > { %1551 = vmatpush.msrb.mxu2 %v1536_v41 }
 0x49f   : > { %1552 = vmatpush.msrb.mxu2 %v1535_v42 }
 0x4a1   : > { %1553 = vmatpush.msrb.mxu2 %v1534_v43 }
 0x4a3   : > { %1554 = vmatpush.msrb.mxu2 %v1533_v44 }
 0x4a5   : > { %1555 = vmatpush.msrb.mxu2 %v1532_v45 }
 0x4a6   : > { %1858 = vmatmul.msk.f32.vlgmr.msrb.gmra.mxu2 %vm1153_vm13, %v2452_v28 }
 0x503   : > { %v1307_v50 = vpop.f32.mrf.mxu1 }
 0x504   : > { %v1310_v51 = vadd.f32 %v1307_v50, %v1254_v47 }
 0x506   : > { %v1365_v0 = vadd.f32 %v1362_v63, %v1310_v51 }
 0x513   : > { %v1392_v55 = vpop.f32.mrf.mxu1 }
 0x514   : > { %1415 = vmatpush.msra.mxu3 %v1392_v55 }
 0x515   : > { %1851 = vmatmul.msk.f32.vlgmr.msra.gmra.mxu3 %vm1209_vm14, %v1850_v54 }
 0x516   : > { %1493 = vmatpush.msrb.mxu3 %v1484_v56 }
 0x518   : > { %1494 = vmatpush.msrb.mxu3 %v1483_v57 }
 0x519   : > { %v1472_v48 = vpop.f32.mrf.mxu2 }
 0x51a   : > { %1495 = vmatpush.msrb.mxu3 %v1482_v58 }
 0x51c   : > { %1496 = vmatpush.msrb.mxu3 %v1481_v59  ;;  %v1695_v59 = vld [vmem:[%s2557_s8] sm:$0xff] }
 0x51e   : > { %1497 = vmatpush.msrb.mxu3 %v1480_v60 }
 0x520   : > { %1498 = vmatpush.msrb.mxu3 %v1479_v61 }
 0x522   : > { %1499 = vmatpush.msrb.mxu3 %v1478_v52 }
 0x524   : > { %1500 = vmatpush.msrb.mxu3 %v1477_v62 }
 0x525   : > { %1855 = vmatmul.msk.f32.vlgmr.msrb.gmra.mxu3 %vm1153_vm13, %v2452_v28 }
 0x529   : > { %v1557_v49 = vpop.f32.mrf.mxu2 }
 0x52a   : > { %1580 = vmatpush.msrb.mxu0 %v1557_v49 }
 0x52b   : > { %1860 = vmatmul.msk.f32.vlgmr.msrb.gmra.mxu0 %vm1209_vm14, %v1859_v53 }
 0x598   : > { %v1417_v1 = vpop.f32.mrf.mxu3 }
 0x599   : > { %v1420_v2 = vadd.f32 %v1417_v1, %v1365_v0  ;;  %v1703_v0 = vld [vmem:[%s2558_s9] sm:$0x1] }
 0x59b   : > { %v1475_v15 = vadd.f32 %v1472_v48, %v1420_v2 }
 0x5a8   : > { %v1502_v5 = vpop.f32.mrf.mxu3  ;;  %v1582_v20 = vpop.f32.mrf.mxu0 }
 0x5a9   : > { %1525 = vmatpush.msrb.mxu1 %v1502_v5 }
 0x5aa   : > { %1857 = vmatmul.msk.f32.vlgmr.msrb.gmra.mxu1 %vm1209_vm14, %v1856_v4 }
 0x5ab   : > { %1603 = vmatpush.msra.mxu1 %v1594_v6 }
 0x5ad   : > { %1604 = vmatpush.msra.mxu1 %v1593_v8 }
 0x5af   : > { %1605 = vmatpush.msra.mxu1 %v1592_v9 }
 0x5b1   : > { %1606 = vmatpush.msra.mxu1 %v1591_v10 }
 0x5b3   : > { %1607 = vmatpush.msra.mxu1 %v1590_v11 }
 0x5b5   : > { %1608 = vmatpush.msra.mxu1 %v1589_v12 }
 0x5b7   : > { %1609 = vmatpush.msra.mxu1 %v1588_v13 }
 0x5b9   : > { %1610 = vmatpush.msra.mxu1 %v1587_v14 }
 0x5ba   : > { %1861 = vmatmul.msk.f32.vlgmr.msra.gmra.mxu1 %vm1153_vm13, %v2452_v28 }
 0x627   : > { %v1527_v16 = vpop.f32.mrf.mxu1 }
 0x628   : > { %v1530_v17 = vadd.f32 %v1527_v16, %v1475_v15 }
 0x62a   : > { %v1585_v21 = vadd.f32 %v1582_v20, %v1530_v17 }
 0x637   : > { %v1612_v19 = vpop.f32.mrf.mxu1 }
 0x638   : > { %1635 = vmatpush.msra.mxu3 %v1612_v19 }
 0x639   : > { %1863 = vmatmul.msk.f32.vlgmr.msra.gmra.mxu3 %vm1209_vm14, %v1862_v18 }
 0x6bc   : > { %v1637_v22 = vpop.f32.mrf.mxu3 }
 0x6bd   : > { %v1640_v23 = vadd.f32 %v1637_v22, %v1585_v21 }
 0x6bf   : > { %v1647_v25 = vadd.f32 %v1645_v24, %v1640_v23 }
 0x6c1   : > { %v1648_v26 = vsel %vm1153_vm13, %v1647_v25, 0.0  ;;  %v1659_v28 = vmul.f32 %v1647_v25, %v1647_v25 }
 0x6c2   : > { %1649 = vadd.xlane.f32.xlu1 %v1648_v26 }
 0x6c3   : > { %v1660_v27 = vsel %vm1153_vm13, %v1659_v28, 0.0 }
 0x6c4   : > { %1661 = vadd.xlane.f32.xlu2 %v1660_v27 }
 0x735   : > { %v1650_v29 = vpop.xlane.xlu1 %1649 }
 0x736   : > { %v1651_v30 = vrot.slane %v1650_v29, 4 }
 0x737   : > { %v1662_v31 = vpop.xlane.xlu2 %1661 }
 0x738   : > { %v1652_v32 = vadd.f32 %v1651_v30, %v1650_v29  ;;  %v1663_v3 = vrot.slane %v1662_v31, 4 }
 0x73a   : > { %v1653_v7 = vrot.slane %v1652_v32, 2  ;;  %v1664_v33 = vadd.f32 %v1663_v3, %v1662_v31 }
 0x73c   : > { %v1654_v34 = vadd.f32 %v1653_v7, %v1652_v32  ;;  %v1665_v35 = vrot.slane %v1664_v33, 2 }
 0x73e   : > { %v1655_v36 = vrot.slane %v1654_v34, 1  ;;  %v1666_v37 = vadd.f32 %v1665_v35, %v1664_v33 }
 0x740   : > { %v1656_v38 = vadd.f32 %v1655_v36, %v1654_v34  ;;  %v1667_v39 = vrot.slane %v1666_v37, 1 }
 0x742   : > { %1873 = vpush %v1656_v38  ;;  %v1668_v40 = vadd.f32 %v1667_v39, %v1666_v37 }
 0x744   : > { %1875 = vpush %v1668_v40 }
 0x773   : > { %s1874_s30 = spop %1873 }
 0x774   : > { %s1658_s11 = smul.f32 0.001953125, %s1874_s30 }
 0x775   : > { %s1876_s26 = spop %1875 }
 0x776   : > { %s1671_s21 = smul.f32 %s1658_s11, %s1658_s11  ;;  %v1673_v51 = vstv %s1658_s11  ;;  %s2013_s11 = scalar_lea.hbm %s2559_s10, 2 }
 0x777   : > { %s1670_s12 = smul.f32 0.001953125, %s1876_s26  ;;  %v1674_v54 = vsub.f32 %v1647_v25, %v1673_v51  ;;  %s1715_s26 = scalar_lea.hbm %s2559_s10, %s2149_s17 }
 0x779   : > { %s1672_s18 = ssub.f32 %s1670_s12, %s1671_s21 }
 0x77b   : > { %s1675_s28 = sadd.f32 1e-05, %s1672_s18  ;;  %s368_s18 = scalar_lea.vmem [#allocation5], %s367_s25 }
 0x77d   : > { %v1676_v41 = vstv %s1675_s28  ;;  %s1717_s28 = sshll.u32 %s368_s18, 4  ;;  %s1718_s28 = int_to_ptr.vmem [resolvable:$true] %s1717_s28 }
 0x77e   : > { %1961 = vrsqrt.f32 %v1676_v41  ;;  %vm1683_vm0 = vweird.f32 %v1676_v41 }
 0x784   : > { %v1962_v42 = vpop.eup %1961 }
 0x785   : > { %v1678_v43 = vmul.f32 %v1962_v42, %v1676_v41  ;;  %vm1684_vm15 = vweird.f32 %v1962_v42 }
 0x786   : > { %vm1685_vm1 = vmor %vm1683_vm0, %vm1684_vm15 }
 0x787   : > { %v1679_v44 = vmul.f32 %v1962_v42, %v1678_v43 }
 0x789   : > { %v1680_v45 = vmul.f32 0.5, %v1679_v44 }
 0x78b   : > { %v1681_v46 = vsub.f32 1.5, %v1680_v45 }
 0x78d   : > { %v1682_v47 = vmul.f32 %v1962_v42, %v1681_v46 }
 0x78f   : > { %v1686_v50 = vsel %vm1685_vm1, %v1962_v42, %v1682_v47 }
 0x790   : > { %1877 = vpush %v1686_v50 }
 0x7c1   : > { %s1878_s27 = spop %1877 }
 0x7c2   : > { %v1688_v55 = vstv %s1878_s27  ;;  %s1719_s27 = sshll.u32 %s1715_s26, 4  ;;  %s1720_s27 = int_to_ptr.hbm [resolvable:$true] %s1719_s27 }
 0x7c3   : > { %v1689_v56 = vmul.f32 %v1688_v55, %v1674_v54  ;;  %s2007_s29 = sshra.s32 %s1720_s27, 4  ;;  %s2008_s29 = int_to_ptr.hbm [resolvable:$true] %s2007_s29 }
 0x7c4   : > { %s2009_s0 = scalar_lea.hbm %s2008_s29, 1  ;;  %p2014_p3 = scmp.lt.s32.totalorder %s2008_s29, %s2559_s10 }
 0x7c5   : > { %v1690_v57 = vmax.f32 %v1689_v56, 0.0  ;;  %p2010_p0 = scmp.ne.s32.totalorder %s2008_s29, %s2009_s0  ;;  %p2015_p4 = scmp.lt.s32.totalorder %s2013_s11, %s2009_s0 }
 0x7c7   : > { %v1691_v58 = vsel %vm1153_vm13, %v1690_v57, 0.0  ;;  %p2011_p1 = pnand %p2010_p0, %p2166_p5  ;;  %p2016_p7 = por %p2015_p4, %p2014_p3 }
 0x7c8   : > { %1692 = vadd.xlane.f32.xlu2 %v1691_v58 }
 0x7c9   : > { %p2012_p2 = pneg %p2011_p1 }
 0x7cb   : > { %p2017_p8 = pnand %p2016_p7, %p2012_p2 }
 0x83b   : > { %v1693_v60 = vpop.xlane.xlu2 %1692 }
 0x83c   : > { %v1694_v61 = vmul.f32 0.015625, %v1693_v60 }
 0x83e   : > { %v1696_v48 = vmul.f32 %v1695_v59, %v1694_v61 }
 0x840   : > { %v1697_v52 = vrot.slane %v1696_v48, 4 }
 0x842   : > { %v1698_v62 = vadd.f32 %v1697_v52, %v1696_v48 }
 0x844   : > { %v1699_v49 = vrot.slane %v1698_v62, 2 }
 0x846   : > { %v1700_v53 = vadd.f32 %v1699_v49, %v1698_v62 }
 0x848   : > { %v1701_v63 = vrot.slane %v1700_v53, 1 }
 0x84a   : > { %v1702_v1 = vadd.f32 %v1701_v63, %v1700_v53 }
 0x84c   : > { %v1704_v2 = vadd.f32 %v1703_v0, %v1702_v1 }
 0x84e   : > { %1705 = vst [vmem:[%s368_s18] sm:$0x1] %v1704_v2 }
 0x84f   : > { %2020 = shalt.err (!%p2017_p8)
}
 0x850   : > { %1883 = dma.vmem_to_hbm [thread:$0]  (%p2166_p5), %s1718_s28, 16, %s1720_s27, %s1707_s20  }
 0x851 PF: > { %p1895_p9 = scmp.ge.s32.totalorder %s2059_s16, 2  ;;  %s1731_s25 = sand.u32 1, %s2047_s13  }
 0x852   : > { %s1732_s26 = scalar_lea.sflag [#allocation4], %s1731_s25 }
 0x853   : > { %p1890_p10 = pnand %p1895_p9, %p2170_p6 }
 0x855   : > { %p1891_p11 = pneg %p1890_p10 }
 0x857   : > { %2042 = dma.done.wait (%p1891_p11), %s1732_s26, 16  }
 0x858   : > { %2044 = vsyncadd (%p1891_p11), %s1732_s26, 4294967280  ;;  %p21_p12 = scmp.ge.s32.totalorder %s2153_s19, 4   ;;  %s2566_s13 = smov %s2051_s14 }
 0x859   : > { %s2567_s14 = smov %s2055_s15  ;;  %s2568_s15 = smov %s2164_s22 }
 0x85a   : > { %s2569_s16 = smov %s2153_s19  ;;  %23 = sbr.rel (!%p21_p12) target bundleno = 6 (0x6), region = 124 }
 0x85f   :  { %1737 = vsyncpa [#allocation3], 1 }
 0x860   :  { %1739 = vsyncpa [#allocation3 + $0x1], 1 }
 0x861   :  { %1740 = vsyncpa [#allocation4], 1 }
 0x862   :  { %1742 = vsyncpa [#allocation4 + $0x1], 1 }

</bundles_post_ra>
